<compile_context>
chip_gen: v5e
topology: v5e:2x2
jax: 0.10.0
libtpu: 0.0.40
codegen_flags: <defaults>
</compile_context>

<pallas_src>
import jax
import jax.numpy as jnp
from jax.experimental import pallas as pl
from jax.experimental.pallas import tpu as pltpu

# ----------------------------- tiny LLaMA config -----------------------------
VOCAB = 64
HIDDEN = 32          # configs.feat_dim == config.hidden_size
N_HEADS = 4
HEAD_DIM = HIDDEN // N_HEADS
INTER = 64
N_LAYERS = 2
NUM_LABELS = 4       # configs.num_labels
LORA_R = 4           # configs.lora_r
LORA_ALPHA = 8       # configs.lora_alpha
RMS_EPS = 1e-6
BATCH = 2
SEQ = 8


# ------------------------------ fused kernel ---------------------------------
def _fused_forward_kernel(
    last_ref,                 # (B,) int32 SMEM (scalar prefetch)
    h_ref,                    # (B*S, H)        embedded inputs (f32)
    mask_ref,                 # (nh*B, S, S)    additive attention mask (f32)
    cos_ref, sin_ref,         # (nh*B, S, hd)   RoPE tables (f32)
    norms_ref,                # (2L+1, H)       attn/mlp/final RMSNorm gammas
    wqkv_ref,                 # (L, H, 3H)      bf16 (q|k|v packed, LoRA folded)
    wo_ref,                   # (L, H, H)       bf16
    wgu_ref,                  # (L, H, 2I)      bf16 (gate|up packed)
    wd_ref,                   # (L, I, H)       bf16
    score_ref,                # (H, NUM_LABELS) bf16
    o_ref,                    # (B, NUM_LABELS) output probabilities (f32)
    hn_scratch,               # VMEM (B*S, H) f32 scratch for pooling gather
):
    B, S, H, hd, nh = BATCH, SEQ, HIDDEN, HEAD_DIM, N_HEADS
    half = hd // 2
    scale = 1.0 / (hd ** 0.5)

    mask = mask_ref[...]          # (nh*B, S, S)
    cos = cos_ref[...]            # (nh*B, S, hd)
    sin = sin_ref[...]

    def rmsnorm(x, row):
        gamma = norms_ref[row:row + 1, :]               # (1, H), static slice
        var = jnp.mean(x * x, axis=-1, keepdims=True)
        return x * jax.lax.rsqrt(var + RMS_EPS) * gamma

    def rope(x):                  # x: (nh*B, S, hd), applied once per tensor
        rot = jnp.concatenate([-x[..., half:], x[..., :half]], axis=-1)
        return x * cos + rot * sin

    def split_heads(flat, base):  # flat: (B*S, 3H) -> (nh*B, S, hd)
        cols = [flat[:, base + hi * hd: base + (hi + 1) * hd]
                for hi in range(nh)]
        return jnp.concatenate(cols, axis=0).reshape(nh * B, S, hd)

    h = h_ref[...]                # (B*S, H) residual stream stays in vregs

    for li in range(N_LAYERS):
        # ------------------------- attention block -------------------------
        hn = rmsnorm(h, 2 * li)
        qkv = jnp.dot(hn.astype(jnp.bfloat16), wqkv_ref[li],
                      preferred_element_type=jnp.float32)       # (B*S, 3H)

        qh = rope(split_heads(qkv, 0))                          # (nh*B, S, hd)
        kh = rope(split_heads(qkv, H))
        vh = split_heads(qkv, 2 * H)

        s = jnp.einsum('nqd,nkd->nqk', qh, kh,
                       preferred_element_type=jnp.float32)      # (nh*B, S, S)
        s = s * scale + mask
        s = s - jnp.max(s, axis=-1, keepdims=True)
        p = jnp.exp(s)
        p = p * pl.reciprocal(jnp.sum(p, axis=-1, keepdims=True), approx=True)
        o = jnp.einsum('nqk,nkd->nqd', p, vh,
                       preferred_element_type=jnp.float32)      # (nh*B, S, hd)

        o_flat = o.reshape(nh * B * S, hd)
        attn = jnp.concatenate(
            [o_flat[hi * B * S:(hi + 1) * B * S, :] for hi in range(nh)],
            axis=-1)                                            # (B*S, H)
        h = h + jnp.dot(attn.astype(jnp.bfloat16), wo_ref[li],
                        preferred_element_type=jnp.float32)

        # ------------------------- SwiGLU MLP block ------------------------
        hn = rmsnorm(h, 2 * li + 1)
        gu = jnp.dot(hn.astype(jnp.bfloat16), wgu_ref[li],
                     preferred_element_type=jnp.float32)        # (B*S, 2I)
        g = gu[:, :INTER]
        u = gu[:, INTER:]
        act = (g * jax.nn.sigmoid(g)) * u
        h = h + jnp.dot(act.astype(jnp.bfloat16), wd_ref[li],
                        preferred_element_type=jnp.float32)

    # ------ final norm, last-valid-token pooling, score head, softmax ------
    hn_scratch[...] = rmsnorm(h, 2 * N_LAYERS)
    rows = [hn_scratch[pl.ds(b * S + last_ref[b], 1), :] for b in range(B)]
    pooled = jnp.concatenate(rows, axis=0)                       # (B, H)
    logits = jnp.dot(pooled.astype(jnp.bfloat16), score_ref[...],
                     preferred_element_type=jnp.float32)         # (B, NL)
    logits = logits - jnp.max(logits, axis=-1, keepdims=True)
    e = jnp.exp(logits)
    o_ref[...] = e * pl.reciprocal(jnp.sum(e, axis=-1, keepdims=True))


def _build_fused_call():
    L, B, S, H, hd, nh = N_LAYERS, BATCH, SEQ, HIDDEN, HEAD_DIM, N_HEADS

    def full(shape):
        zeros = (0,) * len(shape)
        return pl.BlockSpec(shape, lambda i, last, z=zeros: z)

    in_specs = [
        full((B * S, H)),              # h0 (embedded tokens)
        full((nh * B, S, S)),          # additive mask (tiled over heads)
        full((nh * B, S, hd)),         # cos
        full((nh * B, S, hd)),         # sin
        full((2 * L + 1, H)),          # packed norm gammas
        full((L, H, 3 * H)),           # wqkv (packed, LoRA folded)
        full((L, H, H)),               # wo
        full((L, H, 2 * INTER)),       # wgu (packed gate|up)
        full((L, INTER, H)),           # wd
        full((H, NUM_LABELS)),         # score
    ]
    grid_spec = pltpu.PrefetchScalarGridSpec(
        num_scalar_prefetch=1,
        grid=(1,),
        in_specs=in_specs,
        out_specs=full((B, NUM_LABELS)),
        scratch_shapes=[pltpu.VMEM((B * S, H), jnp.float32)],
    )
    return pl.pallas_call(
        _fused_forward_kernel,
        out_shape=jax.ShapeDtypeStruct((B, NUM_LABELS), jnp.float32),
        grid_spec=grid_spec,
        compiler_params=pltpu.CompilerParams(
            dimension_semantics=("arbitrary",)),
    )


FUSED_FORWARD = _build_fused_call()


# --------------------------- params & host-side prep --------------------------
def init_params(key):
    def normal(k, shape, scale=0.02):
        return scale * jax.random.normal(k, shape, dtype=jnp.float32)

    keys = jax.random.split(key, 3 + N_LAYERS)
    params = {
        "embed": normal(keys[0], (VOCAB, HIDDEN)),
        "final_norm": jnp.ones((1, HIDDEN), jnp.float32),
        "score": normal(keys[1], (HIDDEN, NUM_LABELS)),   # bias-free score head
        "layers": [],
    }
    for li in range(N_LAYERS):
        lk = jax.random.split(keys[3 + li], 12)
        params["layers"].append({
            "attn_norm": jnp.ones((1, HIDDEN), jnp.float32),
            "mlp_norm": jnp.ones((1, HIDDEN), jnp.float32),
            "wq": normal(lk[0], (HIDDEN, HIDDEN)),
            "wk": normal(lk[1], (HIDDEN, HIDDEN)),
            "wv": normal(lk[2], (HIDDEN, HIDDEN)),
            "wo": normal(lk[3], (HIDDEN, HIDDEN)),
            "wg": normal(lk[4], (HIDDEN, INTER)),
            "wu": normal(lk[5], (HIDDEN, INTER)),
            "wd": normal(lk[6], (INTER, HIDDEN)),
            # LoRA on q_proj / v_proj (PEFT default). lora_B is zero-init in
            # PEFT; nonzero here to exercise the folded path.
            "wq_a": normal(lk[7], (HIDDEN, LORA_R)),
            "wq_b": normal(lk[8], (LORA_R, HIDDEN)),
            "wv_a": normal(lk[9], (HIDDEN, LORA_R)),
            "wv_b": normal(lk[10], (LORA_R, HIDDEN)),
        })
    return params


def prepare_weights(params):
    """One-time host prep: fold LoRA, pack QKV / gate-up / norms, cast bf16."""
    scale = LORA_ALPHA / LORA_R
    layers = params["layers"]

    wq_eff = [l["wq"] + scale * (l["wq_a"] @ l["wq_b"]) for l in layers]
    wv_eff = [l["wv"] + scale * (l["wv_a"] @ l["wv_b"]) for l in layers]

    wqkv = jnp.stack([
        jnp.concatenate([wq_eff[i], layers[i]["wk"], wv_eff[i]], axis=-1)
        for i in range(N_LAYERS)]).astype(jnp.bfloat16)             # (L, H, 3H)
    wgu = jnp.stack([
        jnp.concatenate([l["wg"], l["wu"]], axis=-1)
        for l in layers]).astype(jnp.bfloat16)                      # (L, H, 2I)
    wo = jnp.stack([l["wo"] for l in layers]).astype(jnp.bfloat16)  # (L, H, H)
    wd = jnp.stack([l["wd"] for l in layers]).astype(jnp.bfloat16)  # (L, I, H)

    norm_rows = []
    for l in layers:
        norm_rows += [l["attn_norm"], l["mlp_norm"]]
    norm_rows.append(params["final_norm"])
    norms = jnp.concatenate(norm_rows, axis=0)                      # (2L+1, H)

    return {
        "embed": params["embed"],
        "norms": norms,
        "wqkv": wqkv,
        "wo": wo,
        "wgu": wgu,
        "wd": wd,
        "score": params["score"].astype(jnp.bfloat16),
    }


@jax.jit
def forward(prepped, input_ids, attention_mask):
    """Equivalent of Network.forward: softmax(model(...).logits, dim=-1)."""
    B, S = input_ids.shape
    h0 = prepped["embed"][input_ids].reshape(B * S, HIDDEN)          # (B*S, H)

    # RoPE tables, pre-tiled to the batched (nh*B, S, hd) layout (cheap, static).
    pos = jnp.arange(S, dtype=jnp.float32)
    inv_freq = 1.0 / (10000.0 ** (
        jnp.arange(0, HEAD_DIM, 2, dtype=jnp.float32) / HEAD_DIM))
    freqs = pos[:, None] * inv_freq[None, :]                         # (S, hd/2)
    emb = jnp.concatenate([freqs, freqs], axis=-1)                   # (S, hd)
    cos = jnp.broadcast_to(jnp.cos(emb)[None], (N_HEADS * B, S, HEAD_DIM))
    sin = jnp.broadcast_to(jnp.sin(emb)[None], (N_HEADS * B, S, HEAD_DIM))

    # Additive causal + padding mask, tiled over heads: index n = head*B + b.
    causal = jnp.tril(jnp.ones((S, S), jnp.float32))                 # (S, S)
    pad = attention_mask.astype(jnp.float32)[:, None, :]             # (B, 1, S)
    keep = causal[None] * pad                                        # (B, S, S)
    add_mask = jnp.where(keep > 0, 0.0, -1e9).astype(jnp.float32)
    mask_t = jnp.tile(add_mask, (N_HEADS, 1, 1))                     # (nh*B,S,S)

    # Index of last non-padded token per sequence (right-padding assumed).
    last_idx = jnp.sum(attention_mask, axis=-1).astype(jnp.int32) - 1  # (B,)

    return FUSED_FORWARD(
        last_idx, h0, mask_t, cos, sin,
        prepped["norms"], prepped["wqkv"], prepped["wo"],
        prepped["wgu"], prepped["wd"], prepped["score"])


# ------------------------------------ main ------------------------------------
if __name__ == "__main__":
    root = jax.random.PRNGKey(0)
    k_params, k_ids = jax.random.split(root)
    params = init_params(k_params)
    prepped = prepare_weights(params)

    input_ids = jax.random.randint(k_ids, (BATCH, SEQ), 0, VOCAB, dtype=jnp.int32)
    attention_mask = jnp.array([[1, 1, 1, 1, 1, 1, 1, 1],
                                [1, 1, 1, 1, 1, 1, 0, 0]], dtype=jnp.int32)
    # labels are only used by compute_loss (not by forward); keep for parity.
    labels = jnp.array([0, 2], dtype=jnp.int32)  # noqa: F841

    probs = jax.block_until_ready(forward(prepped, input_ids, attention_mask))

    assert probs.shape == (BATCH, NUM_LABELS)
    assert bool(jnp.all(jnp.isfinite(probs)))
    assert bool(jnp.allclose(jnp.sum(probs, axis=-1), 1.0, atol=1e-5))
    print("KERNEL_OK")
</pallas_src>

<mosaic_0001>
module attributes {stable_mosaic.version = 11 : i64} {
  func.func @_fused_forward_kernel(%arg0: i32, %arg1: memref<2xi32, #tpu.memory_space<smem>>, %arg2: memref<16x32xf32, #tpu.memory_space<vmem>>, %arg3: memref<8x8x8xf32, #tpu.memory_space<vmem>>, %arg4: memref<8x8x8xf32, #tpu.memory_space<vmem>>, %arg5: memref<8x8x8xf32, #tpu.memory_space<vmem>>, %arg6: memref<5x32xf32, #tpu.memory_space<vmem>>, %arg7: memref<2x32x96xbf16, #tpu.memory_space<vmem>>, %arg8: memref<2x32x32xbf16, #tpu.memory_space<vmem>>, %arg9: memref<2x32x128xbf16, #tpu.memory_space<vmem>>, %arg10: memref<2x64x32xbf16, #tpu.memory_space<vmem>>, %arg11: memref<32x4xbf16, #tpu.memory_space<vmem>>, %arg12: memref<2x4xf32, #tpu.memory_space<vmem>>, %arg13: memref<16x32xf32, #tpu.memory_space<vmem>>) attributes {dimension_semantics = [#tpu.dimension_semantics<arbitrary>], iteration_bounds = array<i64: 1>, scalar_prefetch = 1 : i64, scratch_operands = 1 : i64, tpu.core_type = #tpu.core_type<tc>, window_params = [{pipeline_mode = #tpu.pipeline_mode<synchronous>, transform_indices = @transform_0, window_bounds = array<i64: 16, 32>}, {pipeline_mode = #tpu.pipeline_mode<synchronous>, transform_indices = @transform_1, window_bounds = array<i64: 8, 8, 8>}, {pipeline_mode = #tpu.pipeline_mode<synchronous>, transform_indices = @transform_2, window_bounds = array<i64: 8, 8, 8>}, {pipeline_mode = #tpu.pipeline_mode<synchronous>, transform_indices = @transform_3, window_bounds = array<i64: 8, 8, 8>}, {pipeline_mode = #tpu.pipeline_mode<synchronous>, transform_indices = @transform_4, window_bounds = array<i64: 5, 32>}, {pipeline_mode = #tpu.pipeline_mode<synchronous>, transform_indices = @transform_5, window_bounds = array<i64: 2, 32, 96>}, {pipeline_mode = #tpu.pipeline_mode<synchronous>, transform_indices = @transform_6, window_bounds = array<i64: 2, 32, 32>}, {pipeline_mode = #tpu.pipeline_mode<synchronous>, transform_indices = @transform_7, window_bounds = array<i64: 2, 32, 128>}, {pipeline_mode = #tpu.pipeline_mode<synchronous>, transform_indices = @transform_8, window_bounds = array<i64: 2, 64, 32>}, {pipeline_mode = #tpu.pipeline_mode<synchronous>, transform_indices = @transform_9, window_bounds = array<i64: 32, 4>}, {pipeline_mode = #tpu.pipeline_mode<synchronous>, transform_indices = @transform_10, window_bounds = array<i64: 2, 4>}]} {
    %c0 = arith.constant 0 : index
    %c0_0 = arith.constant 0 : index
    %c0_1 = arith.constant 0 : index
    %0 = vector.load %arg3[%c0, %c0_0, %c0_1] : memref<8x8x8xf32, #tpu.memory_space<vmem>>, vector<8x8x8xf32>
    %c0_2 = arith.constant 0 : index
    %c0_3 = arith.constant 0 : index
    %c0_4 = arith.constant 0 : index
    %1 = vector.load %arg4[%c0_2, %c0_3, %c0_4] : memref<8x8x8xf32, #tpu.memory_space<vmem>>, vector<8x8x8xf32>
    %c0_5 = arith.constant 0 : index
    %c0_6 = arith.constant 0 : index
    %c0_7 = arith.constant 0 : index
    %2 = vector.load %arg5[%c0_5, %c0_6, %c0_7] : memref<8x8x8xf32, #tpu.memory_space<vmem>>, vector<8x8x8xf32>
    %c0_8 = arith.constant 0 : index
    %c0_9 = arith.constant 0 : index
    %3 = vector.load %arg2[%c0_8, %c0_9] : memref<16x32xf32, #tpu.memory_space<vmem>>, vector<16x32xf32>
    %c0_10 = arith.constant 0 : index
    %c0_11 = arith.constant 0 : index
    %4 = vector.load %arg6[%c0_10, %c0_11] : memref<5x32xf32, #tpu.memory_space<vmem>>, vector<1x32xf32>
    %5 = arith.mulf %3, %3 : vector<16x32xf32>
    %cst = arith.constant dense<0.000000e+00> : vector<16xf32>
    %6 = vector.multi_reduction <add>, %5, %cst [1] : vector<16x32xf32> to vector<16xf32>
    %7 = vector.shape_cast %6 : vector<16xf32> to vector<16x1xf32>
    %cst_12 = arith.constant 3.200000e+01 : f32
    %8 = vector.broadcast %cst_12 : f32 to vector<16x1xf32>
    %9 = arith.divf %7, %8 : vector<16x1xf32>
    %cst_13 = arith.constant 9.99999997E-7 : f32
    %10 = vector.broadcast %cst_13 : f32 to vector<16x1xf32>
    %11 = arith.addf %9, %10 : vector<16x1xf32>
    %12 = math.rsqrt %11 : vector<16x1xf32>
    %13 = vector.broadcast %12 : vector<16x1xf32> to vector<16x32xf32>
    %14 = arith.mulf %3, %13 : vector<16x32xf32>
    %15 = vector.broadcast %4 : vector<1x32xf32> to vector<16x32xf32>
    %16 = arith.mulf %14, %15 : vector<16x32xf32>
    %17 = arith.truncf %16 : vector<16x32xf32> to vector<16x32xbf16>
    %c0_14 = arith.constant 0 : index
    %c0_15 = arith.constant 0 : index
    %c0_16 = arith.constant 0 : index
    %18 = vector.load %arg7[%c0_14, %c0_15, %c0_16] : memref<2x32x96xbf16, #tpu.memory_space<vmem>>, vector<1x32x96xbf16>
    %19 = vector.shape_cast %18 : vector<1x32x96xbf16> to vector<32x96xbf16>
    %cst_17 = arith.constant dense<0.000000e+00> : vector<16x96xf32>
    %20 = tpu.matmul %17, %19, %cst_17 {dimension_numbers = #tpu.dot_dimension_numbers<[1], [0], [0], [1], [0, 0, 1, 1], [], []>} : vector<16x32xbf16>, vector<32x96xbf16>, vector<16x96xf32> -> vector<16x96xf32>
    %21 = vector.extract_strided_slice %20 {offsets = [0, 0], sizes = [16, 8], strides = [1, 1]} : vector<16x96xf32> to vector<16x8xf32>
    %22 = vector.extract_strided_slice %20 {offsets = [0, 8], sizes = [16, 8], strides = [1, 1]} : vector<16x96xf32> to vector<16x8xf32>
    %23 = vector.extract_strided_slice %20 {offsets = [0, 16], sizes = [16, 8], strides = [1, 1]} : vector<16x96xf32> to vector<16x8xf32>
    %24 = vector.extract_strided_slice %20 {offsets = [0, 24], sizes = [16, 8], strides = [1, 1]} : vector<16x96xf32> to vector<16x8xf32>
    %25 = tpu.concatenate %21, %22, %23, %24 in 0 : vector<16x8xf32>, vector<16x8xf32>, vector<16x8xf32>, vector<16x8xf32> -> vector<64x8xf32>
    %26 = vector.shape_cast %25 : vector<64x8xf32> to vector<8x8x8xf32>
    %27 = vector.extract_strided_slice %26 {offsets = [0, 0, 4], sizes = [8, 8, 4], strides = [1, 1, 1]} : vector<8x8x8xf32> to vector<8x8x4xf32>
    %cst_18 = arith.constant 0.000000e+00 : f32
    %28 = vector.broadcast %cst_18 : f32 to vector<8x8x4xf32>
    %29 = arith.subf %28, %27 : vector<8x8x4xf32>
    %30 = vector.extract_strided_slice %26 {offsets = [0, 0, 0], sizes = [8, 8, 4], strides = [1, 1, 1]} : vector<8x8x8xf32> to vector<8x8x4xf32>
    %31 = tpu.concatenate %29, %30 in 2 : vector<8x8x4xf32>, vector<8x8x4xf32> -> vector<8x8x8xf32>
    %32 = arith.mulf %26, %1 : vector<8x8x8xf32>
    %33 = arith.mulf %31, %2 : vector<8x8x8xf32>
    %34 = arith.addf %32, %33 : vector<8x8x8xf32>
    %35 = vector.extract_strided_slice %20 {offsets = [0, 32], sizes = [16, 8], strides = [1, 1]} : vector<16x96xf32> to vector<16x8xf32>
    %36 = vector.extract_strided_slice %20 {offsets = [0, 40], sizes = [16, 8], strides = [1, 1]} : vector<16x96xf32> to vector<16x8xf32>
    %37 = vector.extract_strided_slice %20 {offsets = [0, 48], sizes = [16, 8], strides = [1, 1]} : vector<16x96xf32> to vector<16x8xf32>
    %38 = vector.extract_strided_slice %20 {offsets = [0, 56], sizes = [16, 8], strides = [1, 1]} : vector<16x96xf32> to vector<16x8xf32>
    %39 = tpu.concatenate %35, %36, %37, %38 in 0 : vector<16x8xf32>, vector<16x8xf32>, vector<16x8xf32>, vector<16x8xf32> -> vector<64x8xf32>
    %40 = vector.shape_cast %39 : vector<64x8xf32> to vector<8x8x8xf32>
    %41 = vector.extract_strided_slice %40 {offsets = [0, 0, 4], sizes = [8, 8, 4], strides = [1, 1, 1]} : vector<8x8x8xf32> to vector<8x8x4xf32>
    %cst_19 = arith.constant 0.000000e+00 : f32
    %42 = vector.broadcast %cst_19 : f32 to vector<8x8x4xf32>
    %43 = arith.subf %42, %41 : vector<8x8x4xf32>
    %44 = vector.extract_strided_slice %40 {offsets = [0, 0, 0], sizes = [8, 8, 4], strides = [1, 1, 1]} : vector<8x8x8xf32> to vector<8x8x4xf32>
    %45 = tpu.concatenate %43, %44 in 2 : vector<8x8x4xf32>, vector<8x8x4xf32> -> vector<8x8x8xf32>
    %46 = arith.mulf %40, %1 : vector<8x8x8xf32>
    %47 = arith.mulf %45, %2 : vector<8x8x8xf32>
    %48 = arith.addf %46, %47 : vector<8x8x8xf32>
    %49 = vector.extract_strided_slice %20 {offsets = [0, 64], sizes = [16, 8], strides = [1, 1]} : vector<16x96xf32> to vector<16x8xf32>
    %50 = vector.extract_strided_slice %20 {offsets = [0, 72], sizes = [16, 8], strides = [1, 1]} : vector<16x96xf32> to vector<16x8xf32>
    %51 = vector.extract_strided_slice %20 {offsets = [0, 80], sizes = [16, 8], strides = [1, 1]} : vector<16x96xf32> to vector<16x8xf32>
    %52 = vector.extract_strided_slice %20 {offsets = [0, 88], sizes = [16, 8], strides = [1, 1]} : vector<16x96xf32> to vector<16x8xf32>
    %53 = tpu.concatenate %49, %50, %51, %52 in 0 : vector<16x8xf32>, vector<16x8xf32>, vector<16x8xf32>, vector<16x8xf32> -> vector<64x8xf32>
    %54 = vector.shape_cast %53 : vector<64x8xf32> to vector<8x8x8xf32>
    "tpu.trace_start"() <{level = 10 : i32, message = "nqd,nkd->nqk"}> : () -> ()
    %cst_20 = arith.constant dense<0.000000e+00> : vector<8x8x8xf32>
    %55 = tpu.matmul %34, %48, %cst_20 {dimension_numbers = #tpu.dot_dimension_numbers<[2], [2], [1], [1], [0, 0, 0, 1, 1, 1], [0], [0]>} : vector<8x8x8xf32>, vector<8x8x8xf32>, vector<8x8x8xf32> -> vector<8x8x8xf32>
    "tpu.trace_stop"() : () -> ()
    %cst_21 = arith.constant 0.353553385 : f32
    %56 = vector.broadcast %cst_21 : f32 to vector<8x8x8xf32>
    %57 = arith.mulf %55, %56 : vector<8x8x8xf32>
    %58 = arith.addf %57, %0 : vector<8x8x8xf32>
    %cst_22 = arith.constant dense<0xFF800000> : vector<8x8xf32>
    %59 = vector.multi_reduction <maximumf>, %58, %cst_22 [2] : vector<8x8x8xf32> to vector<8x8xf32>
    %60 = vector.shape_cast %59 : vector<8x8xf32> to vector<8x8x1xf32>
    %61 = vector.broadcast %60 : vector<8x8x1xf32> to vector<8x8x8xf32>
    %62 = arith.subf %58, %61 : vector<8x8x8xf32>
    %63 = math.exp %62 : vector<8x8x8xf32>
    %cst_23 = arith.constant dense<0.000000e+00> : vector<8x8xf32>
    %64 = vector.multi_reduction <add>, %63, %cst_23 [2] : vector<8x8x8xf32> to vector<8x8xf32>
    %65 = vector.shape_cast %64 : vector<8x8xf32> to vector<8x8x1xf32>
    %66 = tpu.reciprocal %65 {approx = true} : vector<8x8x1xf32> -> vector<8x8x1xf32>
    %67 = vector.broadcast %66 : vector<8x8x1xf32> to vector<8x8x8xf32>
    %68 = arith.mulf %63, %67 : vector<8x8x8xf32>
    "tpu.trace_start"() <{level = 10 : i32, message = "nqk,nkd->nqd"}> : () -> ()
    %cst_24 = arith.constant dense<0.000000e+00> : vector<8x8x8xf32>
    %69 = tpu.matmul %68, %54, %cst_24 {dimension_numbers = #tpu.dot_dimension_numbers<[2], [1], [1], [2], [0, 0, 0, 1, 1, 2], [0], [0]>} : vector<8x8x8xf32>, vector<8x8x8xf32>, vector<8x8x8xf32> -> vector<8x8x8xf32>
    "tpu.trace_stop"() : () -> ()
    %70 = vector.shape_cast %69 : vector<8x8x8xf32> to vector<64x8xf32>
    %71 = vector.extract_strided_slice %70 {offsets = [0, 0], sizes = [16, 8], strides = [1, 1]} : vector<64x8xf32> to vector<16x8xf32>
    %72 = vector.extract_strided_slice %70 {offsets = [16, 0], sizes = [16, 8], strides = [1, 1]} : vector<64x8xf32> to vector<16x8xf32>
    %73 = vector.extract_strided_slice %70 {offsets = [32, 0], sizes = [16, 8], strides = [1, 1]} : vector<64x8xf32> to vector<16x8xf32>
    %74 = vector.extract_strided_slice %70 {offsets = [48, 0], sizes = [16, 8], strides = [1, 1]} : vector<64x8xf32> to vector<16x8xf32>
    %75 = tpu.concatenate %71, %72, %73, %74 in 1 : vector<16x8xf32>, vector<16x8xf32>, vector<16x8xf32>, vector<16x8xf32> -> vector<16x32xf32>
    %76 = arith.truncf %75 : vector<16x32xf32> to vector<16x32xbf16>
    %c0_25 = arith.constant 0 : index
    %c0_26 = arith.constant 0 : index
    %c0_27 = arith.constant 0 : index
    %77 = vector.load %arg8[%c0_25, %c0_26, %c0_27] : memref<2x32x32xbf16, #tpu.memory_space<vmem>>, vector<1x32x32xbf16>
    %78 = vector.shape_cast %77 : vector<1x32x32xbf16> to vector<32x32xbf16>
    %cst_28 = arith.constant dense<0.000000e+00> : vector<16x32xf32>
    %79 = tpu.matmul %76, %78, %cst_28 {dimension_numbers = #tpu.dot_dimension_numbers<[1], [0], [0], [1], [0, 0, 1, 1], [], []>} : vector<16x32xbf16>, vector<32x32xbf16>, vector<16x32xf32> -> vector<16x32xf32>
    %80 = arith.addf %3, %79 : vector<16x32xf32>
    %c1 = arith.constant 1 : index
    %c0_29 = arith.constant 0 : index
    %81 = vector.load %arg6[%c1, %c0_29] : memref<5x32xf32, #tpu.memory_space<vmem>>, vector<1x32xf32>
    %82 = arith.mulf %80, %80 : vector<16x32xf32>
    %cst_30 = arith.constant dense<0.000000e+00> : vector<16xf32>
    %83 = vector.multi_reduction <add>, %82, %cst_30 [1] : vector<16x32xf32> to vector<16xf32>
    %84 = vector.shape_cast %83 : vector<16xf32> to vector<16x1xf32>
    %cst_31 = arith.constant 3.200000e+01 : f32
    %85 = vector.broadcast %cst_31 : f32 to vector<16x1xf32>
    %86 = arith.divf %84, %85 : vector<16x1xf32>
    %cst_32 = arith.constant 9.99999997E-7 : f32
    %87 = vector.broadcast %cst_32 : f32 to vector<16x1xf32>
    %88 = arith.addf %86, %87 : vector<16x1xf32>
    %89 = math.rsqrt %88 : vector<16x1xf32>
    %90 = vector.broadcast %89 : vector<16x1xf32> to vector<16x32xf32>
    %91 = arith.mulf %80, %90 : vector<16x32xf32>
    %92 = vector.broadcast %81 : vector<1x32xf32> to vector<16x32xf32>
    %93 = arith.mulf %91, %92 : vector<16x32xf32>
    %94 = arith.truncf %93 : vector<16x32xf32> to vector<16x32xbf16>
    %c0_33 = arith.constant 0 : index
    %c0_34 = arith.constant 0 : index
    %c0_35 = arith.constant 0 : index
    %95 = vector.load %arg9[%c0_33, %c0_34, %c0_35] : memref<2x32x128xbf16, #tpu.memory_space<vmem>>, vector<1x32x128xbf16>
    %96 = vector.shape_cast %95 : vector<1x32x128xbf16> to vector<32x128xbf16>
    %cst_36 = arith.constant dense<0.000000e+00> : vector<16x128xf32>
    %97 = tpu.matmul %94, %96, %cst_36 {dimension_numbers = #tpu.dot_dimension_numbers<[1], [0], [0], [1], [0, 0, 1, 1], [], []>} : vector<16x32xbf16>, vector<32x128xbf16>, vector<16x128xf32> -> vector<16x128xf32>
    %98 = vector.extract_strided_slice %97 {offsets = [0, 0], sizes = [16, 64], strides = [1, 1]} : vector<16x128xf32> to vector<16x64xf32>
    %99 = vector.extract_strided_slice %97 {offsets = [0, 64], sizes = [16, 64], strides = [1, 1]} : vector<16x128xf32> to vector<16x64xf32>
    %100 = arith.negf %98 : vector<16x64xf32>
    %101 = math.exp %100 : vector<16x64xf32>
    %cst_37 = arith.constant 1.000000e+00 : f32
    %102 = vector.broadcast %cst_37 : f32 to vector<16x64xf32>
    %103 = arith.addf %102, %101 : vector<16x64xf32>
    %104 = arith.divf %102, %103 : vector<16x64xf32>
    %105 = arith.mulf %98, %104 : vector<16x64xf32>
    %106 = arith.mulf %105, %99 : vector<16x64xf32>
    %107 = arith.truncf %106 : vector<16x64xf32> to vector<16x64xbf16>
    %c0_38 = arith.constant 0 : index
    %c0_39 = arith.constant 0 : index
    %c0_40 = arith.constant 0 : index
    %108 = vector.load %arg10[%c0_38, %c0_39, %c0_40] : memref<2x64x32xbf16, #tpu.memory_space<vmem>>, vector<1x64x32xbf16>
    %109 = vector.shape_cast %108 : vector<1x64x32xbf16> to vector<64x32xbf16>
    %cst_41 = arith.constant dense<0.000000e+00> : vector<16x32xf32>
    %110 = tpu.matmul %107, %109, %cst_41 {dimension_numbers = #tpu.dot_dimension_numbers<[1], [0], [0], [1], [0, 0, 1, 1], [], []>} : vector<16x64xbf16>, vector<64x32xbf16>, vector<16x32xf32> -> vector<16x32xf32>
    %111 = arith.addf %80, %110 : vector<16x32xf32>
    %c2 = arith.constant 2 : index
    %c0_42 = arith.constant 0 : index
    %112 = vector.load %arg6[%c2, %c0_42] : memref<5x32xf32, #tpu.memory_space<vmem>>, vector<1x32xf32>
    %113 = arith.mulf %111, %111 : vector<16x32xf32>
    %cst_43 = arith.constant dense<0.000000e+00> : vector<16xf32>
    %114 = vector.multi_reduction <add>, %113, %cst_43 [1] : vector<16x32xf32> to vector<16xf32>
    %115 = vector.shape_cast %114 : vector<16xf32> to vector<16x1xf32>
    %cst_44 = arith.constant 3.200000e+01 : f32
    %116 = vector.broadcast %cst_44 : f32 to vector<16x1xf32>
    %117 = arith.divf %115, %116 : vector<16x1xf32>
    %cst_45 = arith.constant 9.99999997E-7 : f32
    %118 = vector.broadcast %cst_45 : f32 to vector<16x1xf32>
    %119 = arith.addf %117, %118 : vector<16x1xf32>
    %120 = math.rsqrt %119 : vector<16x1xf32>
    %121 = vector.broadcast %120 : vector<16x1xf32> to vector<16x32xf32>
    %122 = arith.mulf %111, %121 : vector<16x32xf32>
    %123 = vector.broadcast %112 : vector<1x32xf32> to vector<16x32xf32>
    %124 = arith.mulf %122, %123 : vector<16x32xf32>
    %125 = arith.truncf %124 : vector<16x32xf32> to vector<16x32xbf16>
    %c1_46 = arith.constant 1 : index
    %c0_47 = arith.constant 0 : index
    %c0_48 = arith.constant 0 : index
    %126 = vector.load %arg7[%c1_46, %c0_47, %c0_48] : memref<2x32x96xbf16, #tpu.memory_space<vmem>>, vector<1x32x96xbf16>
    %127 = vector.shape_cast %126 : vector<1x32x96xbf16> to vector<32x96xbf16>
    %cst_49 = arith.constant dense<0.000000e+00> : vector<16x96xf32>
    %128 = tpu.matmul %125, %127, %cst_49 {dimension_numbers = #tpu.dot_dimension_numbers<[1], [0], [0], [1], [0, 0, 1, 1], [], []>} : vector<16x32xbf16>, vector<32x96xbf16>, vector<16x96xf32> -> vector<16x96xf32>
    %129 = vector.extract_strided_slice %128 {offsets = [0, 0], sizes = [16, 8], strides = [1, 1]} : vector<16x96xf32> to vector<16x8xf32>
    %130 = vector.extract_strided_slice %128 {offsets = [0, 8], sizes = [16, 8], strides = [1, 1]} : vector<16x96xf32> to vector<16x8xf32>
    %131 = vector.extract_strided_slice %128 {offsets = [0, 16], sizes = [16, 8], strides = [1, 1]} : vector<16x96xf32> to vector<16x8xf32>
    %132 = vector.extract_strided_slice %128 {offsets = [0, 24], sizes = [16, 8], strides = [1, 1]} : vector<16x96xf32> to vector<16x8xf32>
    %133 = tpu.concatenate %129, %130, %131, %132 in 0 : vector<16x8xf32>, vector<16x8xf32>, vector<16x8xf32>, vector<16x8xf32> -> vector<64x8xf32>
    %134 = vector.shape_cast %133 : vector<64x8xf32> to vector<8x8x8xf32>
    %135 = vector.extract_strided_slice %134 {offsets = [0, 0, 4], sizes = [8, 8, 4], strides = [1, 1, 1]} : vector<8x8x8xf32> to vector<8x8x4xf32>
    %cst_50 = arith.constant 0.000000e+00 : f32
    %136 = vector.broadcast %cst_50 : f32 to vector<8x8x4xf32>
    %137 = arith.subf %136, %135 : vector<8x8x4xf32>
    %138 = vector.extract_strided_slice %134 {offsets = [0, 0, 0], sizes = [8, 8, 4], strides = [1, 1, 1]} : vector<8x8x8xf32> to vector<8x8x4xf32>
    %139 = tpu.concatenate %137, %138 in 2 : vector<8x8x4xf32>, vector<8x8x4xf32> -> vector<8x8x8xf32>
    %140 = arith.mulf %134, %1 : vector<8x8x8xf32>
    %141 = arith.mulf %139, %2 : vector<8x8x8xf32>
    %142 = arith.addf %140, %141 : vector<8x8x8xf32>
    %143 = vector.extract_strided_slice %128 {offsets = [0, 32], sizes = [16, 8], strides = [1, 1]} : vector<16x96xf32> to vector<16x8xf32>
    %144 = vector.extract_strided_slice %128 {offsets = [0, 40], sizes = [16, 8], strides = [1, 1]} : vector<16x96xf32> to vector<16x8xf32>
    %145 = vector.extract_strided_slice %128 {offsets = [0, 48], sizes = [16, 8], strides = [1, 1]} : vector<16x96xf32> to vector<16x8xf32>
    %146 = vector.extract_strided_slice %128 {offsets = [0, 56], sizes = [16, 8], strides = [1, 1]} : vector<16x96xf32> to vector<16x8xf32>
    %147 = tpu.concatenate %143, %144, %145, %146 in 0 : vector<16x8xf32>, vector<16x8xf32>, vector<16x8xf32>, vector<16x8xf32> -> vector<64x8xf32>
    %148 = vector.shape_cast %147 : vector<64x8xf32> to vector<8x8x8xf32>
    %149 = vector.extract_strided_slice %148 {offsets = [0, 0, 4], sizes = [8, 8, 4], strides = [1, 1, 1]} : vector<8x8x8xf32> to vector<8x8x4xf32>
    %cst_51 = arith.constant 0.000000e+00 : f32
    %150 = vector.broadcast %cst_51 : f32 to vector<8x8x4xf32>
    %151 = arith.subf %150, %149 : vector<8x8x4xf32>
    %152 = vector.extract_strided_slice %148 {offsets = [0, 0, 0], sizes = [8, 8, 4], strides = [1, 1, 1]} : vector<8x8x8xf32> to vector<8x8x4xf32>
    %153 = tpu.concatenate %151, %152 in 2 : vector<8x8x4xf32>, vector<8x8x4xf32> -> vector<8x8x8xf32>
    %154 = arith.mulf %148, %1 : vector<8x8x8xf32>
    %155 = arith.mulf %153, %2 : vector<8x8x8xf32>
    %156 = arith.addf %154, %155 : vector<8x8x8xf32>
    %157 = vector.extract_strided_slice %128 {offsets = [0, 64], sizes = [16, 8], strides = [1, 1]} : vector<16x96xf32> to vector<16x8xf32>
    %158 = vector.extract_strided_slice %128 {offsets = [0, 72], sizes = [16, 8], strides = [1, 1]} : vector<16x96xf32> to vector<16x8xf32>
    %159 = vector.extract_strided_slice %128 {offsets = [0, 80], sizes = [16, 8], strides = [1, 1]} : vector<16x96xf32> to vector<16x8xf32>
    %160 = vector.extract_strided_slice %128 {offsets = [0, 88], sizes = [16, 8], strides = [1, 1]} : vector<16x96xf32> to vector<16x8xf32>
    %161 = tpu.concatenate %157, %158, %159, %160 in 0 : vector<16x8xf32>, vector<16x8xf32>, vector<16x8xf32>, vector<16x8xf32> -> vector<64x8xf32>
    %162 = vector.shape_cast %161 : vector<64x8xf32> to vector<8x8x8xf32>
    "tpu.trace_start"() <{level = 10 : i32, message = "nqd,nkd->nqk"}> : () -> ()
    %cst_52 = arith.constant dense<0.000000e+00> : vector<8x8x8xf32>
    %163 = tpu.matmul %142, %156, %cst_52 {dimension_numbers = #tpu.dot_dimension_numbers<[2], [2], [1], [1], [0, 0, 0, 1, 1, 1], [0], [0]>} : vector<8x8x8xf32>, vector<8x8x8xf32>, vector<8x8x8xf32> -> vector<8x8x8xf32>
    "tpu.trace_stop"() : () -> ()
    %cst_53 = arith.constant 0.353553385 : f32
    %164 = vector.broadcast %cst_53 : f32 to vector<8x8x8xf32>
    %165 = arith.mulf %163, %164 : vector<8x8x8xf32>
    %166 = arith.addf %165, %0 : vector<8x8x8xf32>
    %cst_54 = arith.constant dense<0xFF800000> : vector<8x8xf32>
    %167 = vector.multi_reduction <maximumf>, %166, %cst_54 [2] : vector<8x8x8xf32> to vector<8x8xf32>
    %168 = vector.shape_cast %167 : vector<8x8xf32> to vector<8x8x1xf32>
    %169 = vector.broadcast %168 : vector<8x8x1xf32> to vector<8x8x8xf32>
    %170 = arith.subf %166, %169 : vector<8x8x8xf32>
    %171 = math.exp %170 : vector<8x8x8xf32>
    %cst_55 = arith.constant dense<0.000000e+00> : vector<8x8xf32>
    %172 = vector.multi_reduction <add>, %171, %cst_55 [2] : vector<8x8x8xf32> to vector<8x8xf32>
    %173 = vector.shape_cast %172 : vector<8x8xf32> to vector<8x8x1xf32>
    %174 = tpu.reciprocal %173 {approx = true} : vector<8x8x1xf32> -> vector<8x8x1xf32>
    %175 = vector.broadcast %174 : vector<8x8x1xf32> to vector<8x8x8xf32>
    %176 = arith.mulf %171, %175 : vector<8x8x8xf32>
    "tpu.trace_start"() <{level = 10 : i32, message = "nqk,nkd->nqd"}> : () -> ()
    %cst_56 = arith.constant dense<0.000000e+00> : vector<8x8x8xf32>
    %177 = tpu.matmul %176, %162, %cst_56 {dimension_numbers = #tpu.dot_dimension_numbers<[2], [1], [1], [2], [0, 0, 0, 1, 1, 2], [0], [0]>} : vector<8x8x8xf32>, vector<8x8x8xf32>, vector<8x8x8xf32> -> vector<8x8x8xf32>
    "tpu.trace_stop"() : () -> ()
    %178 = vector.shape_cast %177 : vector<8x8x8xf32> to vector<64x8xf32>
    %179 = vector.extract_strided_slice %178 {offsets = [0, 0], sizes = [16, 8], strides = [1, 1]} : vector<64x8xf32> to vector<16x8xf32>
    %180 = vector.extract_strided_slice %178 {offsets = [16, 0], sizes = [16, 8], strides = [1, 1]} : vector<64x8xf32> to vector<16x8xf32>
    %181 = vector.extract_strided_slice %178 {offsets = [32, 0], sizes = [16, 8], strides = [1, 1]} : vector<64x8xf32> to vector<16x8xf32>
    %182 = vector.extract_strided_slice %178 {offsets = [48, 0], sizes = [16, 8], strides = [1, 1]} : vector<64x8xf32> to vector<16x8xf32>
    %183 = tpu.concatenate %179, %180, %181, %182 in 1 : vector<16x8xf32>, vector<16x8xf32>, vector<16x8xf32>, vector<16x8xf32> -> vector<16x32xf32>
    %184 = arith.truncf %183 : vector<16x32xf32> to vector<16x32xbf16>
    %c1_57 = arith.constant 1 : index
    %c0_58 = arith.constant 0 : index
    %c0_59 = arith.constant 0 : index
    %185 = vector.load %arg8[%c1_57, %c0_58, %c0_59] : memref<2x32x32xbf16, #tpu.memory_space<vmem>>, vector<1x32x32xbf16>
    %186 = vector.shape_cast %185 : vector<1x32x32xbf16> to vector<32x32xbf16>
    %cst_60 = arith.constant dense<0.000000e+00> : vector<16x32xf32>
    %187 = tpu.matmul %184, %186, %cst_60 {dimension_numbers = #tpu.dot_dimension_numbers<[1], [0], [0], [1], [0, 0, 1, 1], [], []>} : vector<16x32xbf16>, vector<32x32xbf16>, vector<16x32xf32> -> vector<16x32xf32>
    %188 = arith.addf %111, %187 : vector<16x32xf32>
    %c3 = arith.constant 3 : index
    %c0_61 = arith.constant 0 : index
    %189 = vector.load %arg6[%c3, %c0_61] : memref<5x32xf32, #tpu.memory_space<vmem>>, vector<1x32xf32>
    %190 = arith.mulf %188, %188 : vector<16x32xf32>
    %cst_62 = arith.constant dense<0.000000e+00> : vector<16xf32>
    %191 = vector.multi_reduction <add>, %190, %cst_62 [1] : vector<16x32xf32> to vector<16xf32>
    %192 = vector.shape_cast %191 : vector<16xf32> to vector<16x1xf32>
    %cst_63 = arith.constant 3.200000e+01 : f32
    %193 = vector.broadcast %cst_63 : f32 to vector<16x1xf32>
    %194 = arith.divf %192, %193 : vector<16x1xf32>
    %cst_64 = arith.constant 9.99999997E-7 : f32
    %195 = vector.broadcast %cst_64 : f32 to vector<16x1xf32>
    %196 = arith.addf %194, %195 : vector<16x1xf32>
    %197 = math.rsqrt %196 : vector<16x1xf32>
    %198 = vector.broadcast %197 : vector<16x1xf32> to vector<16x32xf32>
    %199 = arith.mulf %188, %198 : vector<16x32xf32>
    %200 = vector.broadcast %189 : vector<1x32xf32> to vector<16x32xf32>
    %201 = arith.mulf %199, %200 : vector<16x32xf32>
    %202 = arith.truncf %201 : vector<16x32xf32> to vector<16x32xbf16>
    %c1_65 = arith.constant 1 : index
    %c0_66 = arith.constant 0 : index
    %c0_67 = arith.constant 0 : index
    %203 = vector.load %arg9[%c1_65, %c0_66, %c0_67] : memref<2x32x128xbf16, #tpu.memory_space<vmem>>, vector<1x32x128xbf16>
    %204 = vector.shape_cast %203 : vector<1x32x128xbf16> to vector<32x128xbf16>
    %cst_68 = arith.constant dense<0.000000e+00> : vector<16x128xf32>
    %205 = tpu.matmul %202, %204, %cst_68 {dimension_numbers = #tpu.dot_dimension_numbers<[1], [0], [0], [1], [0, 0, 1, 1], [], []>} : vector<16x32xbf16>, vector<32x128xbf16>, vector<16x128xf32> -> vector<16x128xf32>
    %206 = vector.extract_strided_slice %205 {offsets = [0, 0], sizes = [16, 64], strides = [1, 1]} : vector<16x128xf32> to vector<16x64xf32>
    %207 = vector.extract_strided_slice %205 {offsets = [0, 64], sizes = [16, 64], strides = [1, 1]} : vector<16x128xf32> to vector<16x64xf32>
    %208 = arith.negf %206 : vector<16x64xf32>
    %209 = math.exp %208 : vector<16x64xf32>
    %cst_69 = arith.constant 1.000000e+00 : f32
    %210 = vector.broadcast %cst_69 : f32 to vector<16x64xf32>
    %211 = arith.addf %210, %209 : vector<16x64xf32>
    %212 = arith.divf %210, %211 : vector<16x64xf32>
    %213 = arith.mulf %206, %212 : vector<16x64xf32>
    %214 = arith.mulf %213, %207 : vector<16x64xf32>
    %215 = arith.truncf %214 : vector<16x64xf32> to vector<16x64xbf16>
    %c1_70 = arith.constant 1 : index
    %c0_71 = arith.constant 0 : index
    %c0_72 = arith.constant 0 : index
    %216 = vector.load %arg10[%c1_70, %c0_71, %c0_72] : memref<2x64x32xbf16, #tpu.memory_space<vmem>>, vector<1x64x32xbf16>
    %217 = vector.shape_cast %216 : vector<1x64x32xbf16> to vector<64x32xbf16>
    %cst_73 = arith.constant dense<0.000000e+00> : vector<16x32xf32>
    %218 = tpu.matmul %215, %217, %cst_73 {dimension_numbers = #tpu.dot_dimension_numbers<[1], [0], [0], [1], [0, 0, 1, 1], [], []>} : vector<16x64xbf16>, vector<64x32xbf16>, vector<16x32xf32> -> vector<16x32xf32>
    %219 = arith.addf %188, %218 : vector<16x32xf32>
    %c4 = arith.constant 4 : index
    %c0_74 = arith.constant 0 : index
    %220 = vector.load %arg6[%c4, %c0_74] : memref<5x32xf32, #tpu.memory_space<vmem>>, vector<1x32xf32>
    %221 = arith.mulf %219, %219 : vector<16x32xf32>
    %cst_75 = arith.constant dense<0.000000e+00> : vector<16xf32>
    %222 = vector.multi_reduction <add>, %221, %cst_75 [1] : vector<16x32xf32> to vector<16xf32>
    %223 = vector.shape_cast %222 : vector<16xf32> to vector<16x1xf32>
    %cst_76 = arith.constant 3.200000e+01 : f32
    %224 = vector.broadcast %cst_76 : f32 to vector<16x1xf32>
    %225 = arith.divf %223, %224 : vector<16x1xf32>
    %cst_77 = arith.constant 9.99999997E-7 : f32
    %226 = vector.broadcast %cst_77 : f32 to vector<16x1xf32>
    %227 = arith.addf %225, %226 : vector<16x1xf32>
    %228 = math.rsqrt %227 : vector<16x1xf32>
    %229 = vector.broadcast %228 : vector<16x1xf32> to vector<16x32xf32>
    %230 = arith.mulf %219, %229 : vector<16x32xf32>
    %231 = vector.broadcast %220 : vector<1x32xf32> to vector<16x32xf32>
    %232 = arith.mulf %230, %231 : vector<16x32xf32>
    %c0_78 = arith.constant 0 : index
    %c0_79 = arith.constant 0 : index
    %233 = vector.load %arg13[%c0_78, %c0_79] : memref<16x32xf32, #tpu.memory_space<vmem>>, vector<16x32xf32>
    tpu.vector_store %arg13[%c0_78, %c0_79], %232 {strides = array<i32>} : memref<16x32xf32, #tpu.memory_space<vmem>>, vector<16x32xf32>,
    %c0_80 = arith.constant 0 : index
    %234 = memref.load %arg1[%c0_80] : memref<2xi32, #tpu.memory_space<smem>>
    %c0_i32 = arith.constant 0 : i32
    %235 = arith.addi %c0_i32, %234 : i32
    %236 = arith.index_cast %235 : i32 to index
    %c0_81 = arith.constant 0 : index
    %237 = vector.load %arg13[%236, %c0_81] : memref<16x32xf32, #tpu.memory_space<vmem>>, vector<1x32xf32>
    %c1_82 = arith.constant 1 : index
    %238 = memref.load %arg1[%c1_82] : memref<2xi32, #tpu.memory_space<smem>>
    %c8_i32 = arith.constant 8 : i32
    %239 = arith.addi %c8_i32, %238 : i32
    %240 = arith.index_cast %239 : i32 to index
    %c0_83 = arith.constant 0 : index
    %241 = vector.load %arg13[%240, %c0_83] : memref<16x32xf32, #tpu.memory_space<vmem>>, vector<1x32xf32>
    %242 = tpu.concatenate %237, %241 in 0 : vector<1x32xf32>, vector<1x32xf32> -> vector<2x32xf32>
    %243 = arith.truncf %242 : vector<2x32xf32> to vector<2x32xbf16>
    %c0_84 = arith.constant 0 : index
    %c0_85 = arith.constant 0 : index
    %244 = vector.load %arg11[%c0_84, %c0_85] : memref<32x4xbf16, #tpu.memory_space<vmem>>, vector<32x4xbf16>
    %cst_86 = arith.constant dense<0.000000e+00> : vector<2x4xf32>
    %245 = tpu.matmul %243, %244, %cst_86 {dimension_numbers = #tpu.dot_dimension_numbers<[1], [0], [0], [1], [0, 0, 1, 1], [], []>} : vector<2x32xbf16>, vector<32x4xbf16>, vector<2x4xf32> -> vector<2x4xf32>
    %cst_87 = arith.constant dense<0xFF800000> : vector<2xf32>
    %246 = vector.multi_reduction <maximumf>, %245, %cst_87 [1] : vector<2x4xf32> to vector<2xf32>
    %247 = vector.shape_cast %246 : vector<2xf32> to vector<2x1xf32>
    %248 = vector.broadcast %247 : vector<2x1xf32> to vector<2x4xf32>
    %249 = arith.subf %245, %248 : vector<2x4xf32>
    %250 = math.exp %249 : vector<2x4xf32>
    %cst_88 = arith.constant dense<0.000000e+00> : vector<2xf32>
    %251 = vector.multi_reduction <add>, %250, %cst_88 [1] : vector<2x4xf32> to vector<2xf32>
    %252 = vector.shape_cast %251 : vector<2xf32> to vector<2x1xf32>
    %253 = tpu.reciprocal %252 : vector<2x1xf32> -> vector<2x1xf32>
    %254 = vector.broadcast %253 : vector<2x1xf32> to vector<2x4xf32>
    %255 = arith.mulf %250, %254 : vector<2x4xf32>
    %c0_89 = arith.constant 0 : index
    %c0_90 = arith.constant 0 : index
    %256 = vector.load %arg12[%c0_89, %c0_90] : memref<2x4xf32, #tpu.memory_space<vmem>>, vector<2x4xf32>
    tpu.vector_store %arg12[%c0_89, %c0_90], %255 {strides = array<i32>} : memref<2x4xf32, #tpu.memory_space<vmem>>, vector<2x4xf32>,
    return
  }
  func.func @transform_0(%arg0: i32, %arg1: memref<2xi32, #tpu.memory_space<smem>>) -> (i32, i32) {
    %c0_i32 = arith.constant 0 : i32
    %c0_i32_0 = arith.constant 0 : i32
    %c0_i32_1 = arith.constant 0 : i32
    return %c0_i32, %c0_i32_0 : i32, i32
  }
  func.func @transform_1(%arg0: i32, %arg1: memref<2xi32, #tpu.memory_space<smem>>) -> (i32, i32, i32) {
    %c0_i32 = arith.constant 0 : i32
    %c0_i32_0 = arith.constant 0 : i32
    %c0_i32_1 = arith.constant 0 : i32
    %c0_i32_2 = arith.constant 0 : i32
    return %c0_i32, %c0_i32_0, %c0_i32_1 : i32, i32, i32
  }
  func.func @transform_2(%arg0: i32, %arg1: memref<2xi32, #tpu.memory_space<smem>>) -> (i32, i32, i32) {
    %c0_i32 = arith.constant 0 : i32
    %c0_i32_0 = arith.constant 0 : i32
    %c0_i32_1 = arith.constant 0 : i32
    %c0_i32_2 = arith.constant 0 : i32
    return %c0_i32, %c0_i32_0, %c0_i32_1 : i32, i32, i32
  }
  func.func @transform_3(%arg0: i32, %arg1: memref<2xi32, #tpu.memory_space<smem>>) -> (i32, i32, i32) {
    %c0_i32 = arith.constant 0 : i32
    %c0_i32_0 = arith.constant 0 : i32
    %c0_i32_1 = arith.constant 0 : i32
    %c0_i32_2 = arith.constant 0 : i32
    return %c0_i32, %c0_i32_0, %c0_i32_1 : i32, i32, i32
  }
  func.func @transform_4(%arg0: i32, %arg1: memref<2xi32, #tpu.memory_space<smem>>) -> (i32, i32) {
    %c0_i32 = arith.constant 0 : i32
    %c0_i32_0 = arith.constant 0 : i32
    %c0_i32_1 = arith.constant 0 : i32
    return %c0_i32, %c0_i32_0 : i32, i32
  }
  func.func @transform_5(%arg0: i32, %arg1: memref<2xi32, #tpu.memory_space<smem>>) -> (i32, i32, i32) {
    %c0_i32 = arith.constant 0 : i32
    %c0_i32_0 = arith.constant 0 : i32
    %c0_i32_1 = arith.constant 0 : i32
    %c0_i32_2 = arith.constant 0 : i32
    return %c0_i32, %c0_i32_0, %c0_i32_1 : i32, i32, i32
  }
  func.func @transform_6(%arg0: i32, %arg1: memref<2xi32, #tpu.memory_space<smem>>) -> (i32, i32, i32) {
    %c0_i32 = arith.constant 0 : i32
    %c0_i32_0 = arith.constant 0 : i32
    %c0_i32_1 = arith.constant 0 : i32
    %c0_i32_2 = arith.constant 0 : i32
    return %c0_i32, %c0_i32_0, %c0_i32_1 : i32, i32, i32
  }
  func.func @transform_7(%arg0: i32, %arg1: memref<2xi32, #tpu.memory_space<smem>>) -> (i32, i32, i32) {
    %c0_i32 = arith.constant 0 : i32
    %c0_i32_0 = arith.constant 0 : i32
    %c0_i32_1 = arith.constant 0 : i32
    %c0_i32_2 = arith.constant 0 : i32
    return %c0_i32, %c0_i32_0, %c0_i32_1 : i32, i32, i32
  }
  func.func @transform_8(%arg0: i32, %arg1: memref<2xi32, #tpu.memory_space<smem>>) -> (i32, i32, i32) {
    %c0_i32 = arith.constant 0 : i32
    %c0_i32_0 = arith.constant 0 : i32
    %c0_i32_1 = arith.constant 0 : i32
    %c0_i32_2 = arith.constant 0 : i32
    return %c0_i32, %c0_i32_0, %c0_i32_1 : i32, i32, i32
  }
  func.func @transform_9(%arg0: i32, %arg1: memref<2xi32, #tpu.memory_space<smem>>) -> (i32, i32) {
    %c0_i32 = arith.constant 0 : i32
    %c0_i32_0 = arith.constant 0 : i32
    %c0_i32_1 = arith.constant 0 : i32
    return %c0_i32, %c0_i32_0 : i32, i32
  }
  func.func @transform_10(%arg0: i32, %arg1: memref<2xi32, #tpu.memory_space<smem>>) -> (i32, i32) {
    %c0_i32 = arith.constant 0 : i32
    %c0_i32_0 = arith.constant 0 : i32
    %c0_i32_1 = arith.constant 0 : i32
    return %c0_i32, %c0_i32_0 : i32, i32
  }
}

</mosaic_0001>

<bundles_post_ra>
// kernel: forward.1
= control target key start
LH: loop header
LB: loop body
LE: loop exit
PB: predicated region body
PF: predicated region fallthrough
CT: control target
= control target key end

     0   :  { %s2859_s20 = smov [#allocation4]   ;;  %s3872_s0 = inlined_call_operand.vmem [shape: s32[2], index: 0, kind: input, shape index: {}]   ;;  %s3873_s1 = inlined_call_operand.vmem [shape: f32[16,32], index: 1, kind: input, shape index: {}]   ;;  %s3874_s2 = inlined_call_operand.vmem [shape: f32[8,8,8], index: 2, kind: input, shape index: {}]   ;;  %s3875_s3 = inlined_call_operand.vmem [shape: f32[8,8,8], index: 3, kind: input, shape index: {}]   ;;  %s3876_s4 = inlined_call_operand.vmem [shape: f32[8,8,8], index: 4, kind: input, shape index: {}]   ;;  %s3877_s5 = inlined_call_operand.vmem [shape: f32[5,32], index: 5, kind: input, shape index: {}]   ;;  %s3878_s6 = inlined_call_operand.vmem [shape: bf16[2,32,96], index: 6, kind: input, shape index: {}]   ;;  %s3879_s7 = inlined_call_operand.vmem [shape: bf16[2,32,32], index: 7, kind: input, shape index: {}]   ;;  %s3880_s8 = inlined_call_operand.vmem [shape: bf16[2,32,128], index: 8, kind: input, shape index: {}]   ;;  %s3881_s9 = inlined_call_operand.vmem [shape: bf16[2,64,32], index: 9, kind: input, shape index: {}]   ;;  %s3882_s10 = inlined_call_operand.vmem [shape: bf16[32,4], index: 10, kind: input, shape index: {}]   ;;  %s3883_s11 = inlined_call_operand.hbm [shape: f32[2,4], index: 11, kind: output, shape index: {}]  }
   0x1   :  { %s17_s19 = sshll.u32 %s3872_s0, 4  ;;  %s18_s19 = int_to_ptr.vmem [resolvable:$true] %s17_s19 }
   0x2   :  { %20 = dma.vmem_to_smem %s18_s19, 16, %s2859_s20, [#allocation3] }
   0x3   :  { %2855 = dma.done.wait [#allocation3], 16 }
   0x4   :  { %2856 = vsyncadd [#allocation3], 4294967280 }
   0x5   :  { %23 = sfence }
   0x6   :  { %v70_v0 = vld [vmem:[%s3873_s1] sm:$0xff]  ;;  %vm75_vm0 = vcmask 261120   ;;  %v71_v2 = vld [vmem:[%s3873_s1 + $0x8] sm:$0xff] }
   0x7   :  { %v73_v1 = vmul.f32 %v70_v0, %v70_v0 }
   0x8   :  { %24 = vsyncpa [#allocation6], 0  ;;  %v74_v4 = vmul.f32 %v71_v2, %v71_v2  ;;  %v2860_v6 = vmov 32.0   ;;  %v2575_v12 = vld [vmem:[%s3878_s6 + $0x8] sm:$0xff]  ;;  %v2574_v14 = vld [vmem:[%s3878_s6] sm:$0xff]  ;;  %s2861_s30 = smov 32  }
   0x9   :  { %v76_v3 = vsel %vm75_vm0, %v73_v1, 0.0  ;;  %2687 = vrcp.f32 %v2860_v6  ;;  %144 = vmatpush.bf16.msra.mxu0 %v2575_v12  ;;  %v2958_v18 = vld [vmem:[%s3875_s3] sm:$0xff]  ;;  %s2862_s14 = smov 112   ;;  %s2863_s15 = smov 92   ;;  %vm236_vm8 = vcmask 31744   ;;  %v3070_v6 = vld [vmem:[%s3875_s3 + $0x38] sm:$0xff] }
   0xa   :  { %77 = vadd.xlane.f32.xlu0 %v76_v3  ;;  %v79_v5 = vsel %vm75_vm0, %v74_v4, 0.0  ;;  %333 = vrot.lane.b32.xlu2 %v2958_v18, %s2861_s30  ;;  %v2682_v36 = vld [vmem:[%s3877_s5] ss:$0 sm:$0xff]  ;;  %s2864_s16 = smov 120   ;;  %s2865_s19 = smov 104   ;;  %v3063_v3 = vld [vmem:[%s3876_s4 + $0x8] sm:$0xff] }
   0xb   :  { %v2986_v45 = vld [vmem:[%s3875_s3 + $0x20] sm:$0xff]  ;;  %s2866_s20 = smov 100   ;;  %s2867_s0 = smov 124   ;;  %v3108_v12 = vld [vmem:[%s3875_s3 + $0x30] sm:$0xff]  ;;  %vm416_vm9 = vcmask 64512   ;;  %vm976_vm10 = vcmask 130048  }
   0xc   :  { %v3037_v58 = vld [vmem:[%s3876_s4] sm:$0xff]  ;;  %s2868_s18 = smov 4   ;;  %s2869_s23 = smov 96   ;;  %vm979_vm11 = vcmask 195584  }
   0xd   :  { %145 = vmatpush.bf16.msra.mxu0 %v2574_v14  ;;  %s2870_s13 = smov 64   ;;  %s2871_s17 = smov 8  }
   0xe   :  { %s2872_s21 = smov 24   ;;  %s2873_s22 = smov 16  }
   0xf   :  { %v2688_v7 = vpop.eup %2687  ;;  %s2874_s29 = smov [#allocation5]   ;;  %s2391_s25 = sshll.u32 %s3883_s11, 4  ;;  %s2392_s25 = int_to_ptr.hbm [resolvable:$true] %s2391_s25 }
  0x10   :  { %v83_v8 = vmul.f32 32.0, %v2688_v7  ;;  %vm87_vm1 = vweird.f32 %v2688_v7  ;;  %s2389_s12 = sshll.u32 %s2874_s29, 4  ;;  %s2390_s12 = int_to_ptr.vmem [resolvable:$true] %s2389_s12 }
  0x12   :  { %80 = vadd.xlane.f32.xlu0 %v79_v5  ;;  %v84_v9 = vsub.f32 1.0, %v83_v8  ;;  %v3080_v8 = vld [vmem:[%s3875_s3 + $0x8] sm:$0xff] }
  0x14   :  { %v85_v10 = vmul.f32 %v2688_v7, %v84_v9  ;;  %v3087_v9 = vld [vmem:[%s3875_s3 + $0x18] sm:$0xff] }
  0x16   :  { %v86_v11 = vadd.f32 %v2688_v7, %v85_v10 }
  0x18   :  { %v2949_v13 = vsel %vm87_vm1, %v2688_v7, %v86_v11  ;;  %v3101_v11 = vld [vmem:[%s3875_s3 + $0x28] sm:$0xff] }
  0x64   :  { %v3002_v47 = vpop.permute.xlu2 %333 }
  0x7d   :  { %v78_v15 = vpop.xlane.xlu0 %77 }
  0x7e   :  { %v89_v16 = vmul.f32 %v2949_v13, %v78_v15  ;;  %v3117_v15 = vld [vmem:[%s3876_s4 + $0x20] sm:$0xff] }
  0x80   :  { %v91_v17 = vadd.f32 1e-06, %v89_v16 }
  0x82   :  { %2689 = vrsqrt.f32 %v91_v17  ;;  %vm99_vm3 = vweird.f32 %v91_v17 }
  0x85   :  { %v81_v19 = vpop.xlane.xlu0 %80 }
  0x86   :  { %v90_v20 = vmul.f32 %v2949_v13, %v81_v19 }
  0x88   :  { %v2690_v21 = vpop.eup %2689  ;;  %v92_v22 = vadd.f32 1e-06, %v90_v20  ;;  %v3125_v20 = vld [vmem:[%s3876_s4 + $0x10] sm:$0xff] }
  0x89   :  { %v94_v23 = vmul.f32 %v2690_v21, %v91_v17  ;;  %vm100_vm2 = vweird.f32 %v2690_v21 }
  0x8a   :  { %2691 = vrsqrt.f32 %v92_v22  ;;  %vm101_vm4 = vmor %vm99_vm3, %vm100_vm2  ;;  %vm109_vm6 = vweird.f32 %v92_v22 }
  0x8b   :  { %v95_v24 = vmul.f32 %v2690_v21, %v94_v23 }
  0x8d   :  { %v96_v25 = vmul.f32 0.5, %v95_v24 }
  0x8f   :  { %v97_v26 = vsub.f32 1.5, %v96_v25  ;;  %v3133_v25 = vld [vmem:[%s3876_s4 + $0x30] sm:$0xff] }
  0x90   :  { %v2692_v27 = vpop.eup %2691 }
  0x91   :  { %v104_v28 = vmul.f32 %v2692_v27, %v92_v22  ;;  %v98_v29 = vmul.f32 %v2690_v21, %v97_v26  ;;  %vm110_vm5 = vweird.f32 %v2692_v27 }
  0x92   :  { %vm111_vm7 = vmor %vm109_vm6, %vm110_vm5 }
  0x93   :  { %v105_v30 = vmul.f32 %v2692_v27, %v104_v28  ;;  %v102_v33 = vsel %vm101_vm4, %v2690_v21, %v98_v29 }
  0x94   :  { %v113_v35 = vmul.f32 %v102_v33, %v70_v0  ;;  %v3053_v0 = vld [vmem:[%s3875_s3 + $0x10] sm:$0xff] }
  0x95   :  { %v106_v31 = vmul.f32 0.5, %v105_v30 }
  0x96   :  { %v116_v39 = vmul.f32 %v2682_v36, %v113_v35 }
  0x97   :  { %v107_v32 = vsub.f32 1.5, %v106_v31  ;;  %v3141_v31 = vld [vmem:[%s3876_s4 + $0x38] sm:$0xff] }
  0x99   :  { %v108_v34 = vmul.f32 %v2692_v27, %v107_v32 }
  0x9b   :  { %v112_v37 = vsel %vm111_vm7, %v2692_v27, %v108_v34 }
  0x9c   :  { %v114_v38 = vmul.f32 %v112_v37, %v71_v2 }
  0x9e   :  { %v117_v40 = vmul.f32 %v2682_v36, %v114_v38  ;;  %v3149_v36 = vld [vmem:[%s3876_s4 + $0x18] sm:$0xff] }
  0xa0   :  { %v118_v41 = vpack.c.bf16 %v117_v40, %v116_v39 }
  0xa2   :  { %2411 = vmatmul.msk.bf16.vlgmr.msra.gmra.mxu0 %vm75_vm0, %v118_v41 }
 0x11f   :  { %v2967_v42 = vpop.f32.mrf.mxu0 }
 0x120   :  { %160 = vrot.lane.b32.xlu1 %v2967_v42, %s2862_s14  ;;  %v172_v43 = vsub.f32 0.0, %v2967_v42  ;;  %v357_v41 = vmul.f32 %v3002_v47, %v2967_v42 }
 0x122   :  { %269 = vrot.lane.b32.xlu2 %v172_v43, %s2863_s15 }
 0x127   :  { %v2975_v44 = vpop.f32.mrf.mxu0 }
 0x128   :  { %154 = vrot.lane.b32.xlu1 %v2967_v42, %s2864_s16  ;;  %162 = vrot.lane.b32.xlu0 %v2975_v44, %s2862_s14  ;;  %v173_v46 = vsub.f32 0.0, %v2975_v44 }
 0x12a   :  { %156 = vrot.lane.b32.xlu2 %v2975_v44, %s2864_s16 }
 0x130   :  { %166 = vrot.lane.b32.xlu1 %v2967_v42, %s2865_s19  ;;  %341 = vrot.lane.b32.xlu0 %v2986_v45, %s2861_s30 }
 0x132   :  { %168 = vrot.lane.b32.xlu2 %v2975_v44, %s2865_s19 }
 0x138   :  { %293 = vrot.lane.b32.xlu1 %v2967_v42, %s2866_s20  ;;  %295 = vrot.lane.b32.xlu0 %v2975_v44, %s2866_s20 }
 0x13a   :  { %271 = vrot.lane.b32.xlu2 %v173_v46, %s2863_s15 }
 0x17c   :  { %v270_v50 = vpop.permute.xlu2 %269 }
 0x184   :  { %v3018_v53 = vpop.permute.xlu2 %156 }
 0x185   :  { %v175_v7 = vsub.f32 0.0, %v3018_v53 }
 0x18c   :  { %v3032_v57 = vpop.permute.xlu2 %168 }
 0x18d   :  { %v179_v62 = vsub.f32 0.0, %v3032_v57 }
 0x192   :  { %v3004_v48 = vpop.permute.xlu1 %160 }
 0x193   :  { %301 = vrot.lane.b32.xlu1 %v3004_v48, %s2866_s20  ;;  %v176_v49 = vsub.f32 0.0, %v3004_v48 }
 0x194   :  { %v272_v2 = vpop.permute.xlu2 %271 }
 0x195   :  { %277 = vrot.lane.b32.xlu2 %v176_v49, %s2863_s15 }
 0x19a   :  { %v3010_v51 = vpop.permute.xlu1 %154  ;;  %v3020_v54 = vpop.permute.xlu0 %162 }
 0x19b   :  { %297 = vrot.lane.b32.xlu0 %v3010_v51, %s2866_s20  ;;  %v174_v52 = vsub.f32 0.0, %v3010_v51  ;;  %v177_v10 = vsub.f32 0.0, %v3020_v54 }
 0x19d   :  { %273 = vrot.lane.b32.xlu2 %v174_v52, %s2863_s15 }
 0x1a2   :  { %v3022_v55 = vpop.permute.xlu1 %166  ;;  %v3039_v60 = vpop.permute.xlu0 %341 }
 0x1a3   :  { %305 = vrot.lane.b32.xlu1 %v3022_v55, %s2866_s20  ;;  %v178_v56 = vsub.f32 0.0, %v3022_v55 }
 0x1a5   :  { %281 = vrot.lane.b32.xlu0 %v178_v56, %s2863_s15  ;;  %299 = vrot.lane.b32.xlu2 %v3018_v53, %s2866_s20 }
 0x1aa   :  { %v294_v59 = vpop.permute.xlu1 %293  ;;  %v296_v1 = vpop.permute.xlu0 %295 }
 0x1ab   :  { %v317_v61 = vsel %vm236_vm8, %v270_v50, %v294_v59  ;;  %v318_v4 = vsel %vm236_vm8, %v272_v2, %v296_v1  ;;  %v3166_v50 = vld [vmem:[%s3876_s4 + $0x28] sm:$0xff] }
 0x1ac   :  { %v365_v63 = vmul.f32 %v317_v61, %v3037_v58  ;;  %v366_v5 = vmul.f32 %v318_v4, %v3063_v3  ;;  %v361_v4 = vmul.f32 %v3039_v60, %v3004_v48 }
 0x1ad   :  { %303 = vrot.lane.b32.xlu2 %v3020_v54, %s2866_s20  ;;  %283 = vrot.lane.b32.xlu0 %v179_v62, %s2863_s15 }
 0x1ae   :  { %381 = vrot.lane.b32.xlu1 %v365_v63, %s2861_s30 }
 0x1b5   :  { %196 = vrot.lane.b32.xlu2 %v176_v49, %s2867_s0  ;;  %337 = vrot.lane.b32.xlu0 %v3053_v0, %s2861_s30 }
 0x1b6   :  { %307 = vrot.lane.b32.xlu1 %v3032_v57, %s2866_s20 }
 0x1bd   :  { %347 = vrot.lane.b32.xlu0 %v3070_v6, %s2861_s30  ;;  %383 = vrot.lane.b32.xlu2 %v366_v5, %s2861_s30 }
 0x1be   :  { %275 = vrot.lane.b32.xlu1 %v175_v7, %s2863_s15 }
 0x1c5   :  { %335 = vrot.lane.b32.xlu0 %v3080_v8, %s2861_s30 }
 0x1c6   :  { %339 = vrot.lane.b32.xlu1 %v3087_v9, %s2861_s30 }
 0x1cd   :  { %188 = vrot.lane.b32.xlu0 %v172_v43, %s2867_s0 }
 0x1ce   :  { %279 = vrot.lane.b32.xlu1 %v177_v10, %s2863_s15 }
 0x1d5   :  { %220 = vrot.lane.b32.xlu0 %v3004_v48, %s2868_s18 }
 0x1d6   :  { %343 = vrot.lane.b32.xlu1 %v3101_v11, %s2861_s30 }
 0x1de   :  { %345 = vrot.lane.b32.xlu1 %v3108_v12, %s2861_s30 }
 0x1e6   :  { %212 = vrot.lane.b32.xlu1 %v2967_v42, %s2868_s18 }
 0x1ef   :  { %v278_v14 = vpop.permute.xlu2 %277 }
 0x1f7   :  { %v274_v21 = vpop.permute.xlu2 %273 }
 0x1ff   :  { %v300_v37 = vpop.permute.xlu2 %299 }
 0x205   :  { %v302_v16 = vpop.permute.xlu1 %301 }
 0x206   :  { %v321_v17 = vsel %vm236_vm8, %v278_v14, %v302_v16 }
 0x207   :  { %v369_v19 = vmul.f32 %v321_v17, %v3117_v15  ;;  %v304_v59 = vpop.permute.xlu2 %303 }
 0x209   :  { %389 = vrot.lane.b32.xlu2 %v369_v19, %s2861_s30 }
 0x20d   :  { %v298_v22 = vpop.permute.xlu0 %297 }
 0x20e   :  { %v319_v23 = vsel %vm236_vm8, %v274_v21, %v298_v22 }
 0x20f   :  { %v367_v24 = vmul.f32 %v319_v23, %v3125_v20 }
 0x211   :  { %385 = vrot.lane.b32.xlu2 %v367_v24, %s2861_s30 }
 0x215   :  { %v306_v26 = vpop.permute.xlu1 %305 }
 0x217   :  { %v282_v27 = vpop.permute.xlu0 %281 }
 0x218   :  { %v323_v28 = vsel %vm236_vm8, %v282_v27, %v306_v26 }
 0x219   :  { %v371_v29 = vmul.f32 %v323_v28, %v3133_v25 }
 0x21b   :  { %393 = vrot.lane.b32.xlu2 %v371_v29, %s2861_s30 }
 0x21f   :  { %v284_v32 = vpop.permute.xlu0 %283 }
 0x220   :  { %v382_v30 = vpop.permute.xlu1 %381 }
 0x221   :  { %v405_v49 = vadd.f32 %v382_v30, %v357_v41 }
 0x228   :  { %v308_v33 = vpop.permute.xlu1 %307 }
 0x229   :  { %v324_v34 = vsel %vm236_vm8, %v284_v32, %v308_v33 }
 0x22a   :  { %v372_v35 = vmul.f32 %v324_v34, %v3141_v31 }
 0x22c   :  { %395 = vrot.lane.b32.xlu2 %v372_v35, %s2861_s30 }
 0x230   :  { %v276_v38 = vpop.permute.xlu1 %275 }
 0x231   :  { %v320_v39 = vsel %vm236_vm8, %v276_v38, %v300_v37 }
 0x232   :  { %v368_v40 = vmul.f32 %v320_v39, %v3149_v36  ;;  %v245_v39 = vmul.f32 %v2967_v42, %v2958_v18 }
 0x234   :  { %194 = vrot.lane.b32.xlu2 %v175_v7, %s2867_s0  ;;  %387 = vrot.lane.b32.xlu1 %v368_v40, %s2861_s30 }
 0x238   :  { %v3157_v43 = vpop.permute.xlu1 %339 }
 0x23c   :  { %202 = vrot.lane.b32.xlu2 %v179_v62, %s2867_s0  ;;  %414 = vrot.lane.b32.xlu1 %v405_v49, %s2869_s23  ;;  %v197_v62 = vpop.permute.xlu2 %196 }
 0x240   :  { %v280_v61 = vpop.permute.xlu1 %279 }
 0x241   :  { %v322_v63 = vsel %vm236_vm8, %v280_v61, %v304_v59 }
 0x242   :  { %v370_v1 = vmul.f32 %v322_v63, %v3166_v50 }
 0x244   :  { %198 = vrot.lane.b32.xlu2 %v177_v10, %s2867_s0  ;;  %216 = vrot.lane.b32.xlu1 %v3010_v51, %s2868_s18  ;;  %v384_v2 = vpop.permute.xlu2 %383 }
 0x245   :  { %391 = vrot.lane.b32.xlu0 %v370_v1, %s2861_s30 }
 0x248   :  { %v3204_v23 = vpop.permute.xlu1 %343 }
 0x249   :  { %v362_v59 = vmul.f32 %v3204_v23, %v3020_v54 }
 0x24c   :  { %214 = vrot.lane.b32.xlu1 %v2975_v44, %s2868_s18 }
 0x24d   :  { %192 = vrot.lane.b32.xlu0 %v174_v52, %s2867_s0  ;;  %v3189_v52 = vpop.permute.xlu0 %337 }
 0x24e   :  { %v359_v10 = vmul.f32 %v3189_v52, %v3010_v51 }
 0x250   :  { %v3206_v24 = vpop.permute.xlu1 %345 }
 0x255   :  { %218 = vrot.lane.b32.xlu0 %v3018_v53, %s2868_s18 }
 0x258   :  { %v213_v27 = vpop.permute.xlu1 %212 }
 0x25d   :  { %226 = vrot.lane.b32.xlu0 %v3032_v57, %s2868_s18 }
 0x263   :  { %v390_v5 = vpop.permute.xlu2 %389 }
 0x264   :  { %v409_v7 = vadd.f32 %v390_v5, %v361_v4 }
 0x265   :  { %190 = vrot.lane.b32.xlu0 %v173_v46, %s2867_s0  ;;  %v3199_v46 = vpop.permute.xlu0 %347 }
 0x266   :  { %527 = vrot.lane.b32.xlu2 %v409_v7, %s2869_s23  ;;  %v364_v19 = vmul.f32 %v3199_v46, %v3032_v57 }
 0x26b   :  { %v386_v14 = vpop.permute.xlu2 %385 }
 0x26c   :  { %v407_v16 = vadd.f32 %v386_v14, %v359_v10  ;;  %v249_v10 = vmul.f32 %v3004_v48, %v2986_v45  ;;  %v247_v45 = vmul.f32 %v3010_v51, %v3053_v0 }
 0x26d   :  { %222 = vrot.lane.b32.xlu0 %v3020_v54, %s2868_s18  ;;  %v3208_v26 = vpop.permute.xlu0 %335 }
 0x26e   :  { %471 = vrot.lane.b32.xlu1 %v407_v16, %s2869_s23  ;;  %v358_v34 = vmul.f32 %v3208_v26, %v2975_v44 }
 0x270   :  { %v406_v41 = vadd.f32 %v384_v2, %v358_v34  ;;  %v363_v2 = vmul.f32 %v3206_v24, %v3022_v55 }
 0x275   :  { %200 = vrot.lane.b32.xlu0 %v178_v56, %s2867_s0  ;;  %v394_v17 = vpop.permute.xlu2 %393  ;;  %v189_v29 = vpop.permute.xlu0 %188  ;;  %v360_v56 = vmul.f32 %v3157_v43, %v3018_v53 }
 0x276   :  { %v237_v33 = vsel %vm236_vm8, %v189_v29, %v213_v27  ;;  %v411_v5 = vadd.f32 %v394_v17, %v363_v2 }
 0x277   :  { %v253_v35 = vmul.f32 %v237_v33, %v3037_v58 }
 0x279   :  { %v261_v49 = vadd.f32 %v253_v35, %v245_v39  ;;  %v250_v35 = vmul.f32 %v3020_v54, %v3101_v11  ;;  %v248_v39 = vmul.f32 %v3018_v53, %v3087_v9 }
 0x27d   :  { %v221_v40 = vpop.permute.xlu0 %220 }
 0x27e   :  { %v241_v18 = vsel %vm236_vm8, %v197_v62, %v221_v40 }
 0x27f   :  { %v257_v1 = vmul.f32 %v241_v18, %v3117_v15  ;;  %v251_v18 = vmul.f32 %v3022_v55, %v3108_v12  ;;  %v48_v12 = vld [vmem:[%s3874_s2 + $0x10] sm:$0xff] }
 0x281   :  { %v265_v14 = vadd.f32 %v257_v1, %v249_v10 }
 0x286   :  { %v396_v21 = vpop.permute.xlu2 %395 }
 0x287   :  { %v412_v22 = vadd.f32 %v396_v21, %v364_v19 }
 0x289   :  { %611 = vrot.lane.b32.xlu2 %v412_v22, %s2869_s23 }
 0x28e   :  { %v195_v28 = vpop.permute.xlu2 %194 }
 0x296   :  { %v203_v37 = vpop.permute.xlu2 %202 }
 0x29e   :  { %v199_v58 = vpop.permute.xlu2 %198 }
 0x2a6   :  { %v388_v30 = vpop.permute.xlu1 %387 }
 0x2a7   :  { %v408_v32 = vadd.f32 %v388_v30, %v360_v56 }
 0x2a9   :  { %499 = vrot.lane.b32.xlu1 %v408_v32, %s2869_s23 }
 0x2ae   :  { %v415_v38 = vpop.permute.xlu1 %414 }
 0x2af   :  { %2412 = vmatpush.xpose.msk.msra.mxu1 %vm416_vm9, %v415_v38 }
 0x2b1   :  { %443 = vrot.lane.b32.xlu1 %v406_v41, %s2869_s23 }
 0x2b2   :  { %2413 = vmatmul.msk.f32.vlgmr.msra.gmra.mxu1 %vm416_vm9, %v261_v49 }
 0x2b6   :  { %v217_v15 = vpop.permute.xlu1 %216 }
 0x2b7   :  { %v392_v61 = vpop.permute.xlu0 %391 }
 0x2b8   :  { %v410_v63 = vadd.f32 %v392_v61, %v362_v59  ;;  %v246_v59 = vmul.f32 %v2975_v44, %v3080_v8  ;;  %v46_v8 = vld [vmem:[%s3874_s2] sm:$0xff] }
 0x2b9   :  { %224 = vrot.lane.b32.xlu1 %v3022_v55, %s2868_s18 }
 0x2ba   :  { %555 = vrot.lane.b32.xlu2 %v410_v63, %s2869_s23 }
 0x2be   :  { %v215_v19 = vpop.permute.xlu1 %214 }
 0x2bf   :  { %v193_v4 = vpop.permute.xlu0 %192 }
 0x2c0   :  { %v528_v7 = vpop.permute.xlu2 %527  ;;  %v239_v21 = vsel %vm236_vm8, %v193_v4, %v217_v15  ;;  %v51_v15 = vld [vmem:[%s3874_s2 + $0x28] sm:$0xff] }
 0x2c1   :  { %2420 = vmatpush.xpose.msk.msra.mxu2 %vm416_vm9, %v528_v7  ;;  %v255_v17 = vmul.f32 %v239_v21, %v3125_v20 }
 0x2c2   :  { %583 = vrot.lane.b32.xlu2 %v411_v5, %s2869_s23 }
 0x2c3   :  { %v263_v30 = vadd.f32 %v255_v17, %v247_v45 }
 0x2c4   :  { %2421 = vmatmul.msk.f32.vlgmr.msra.gmra.mxu2 %vm416_vm9, %v265_v14 }
 0x2c7   :  { %v219_v16 = vpop.permute.xlu0 %218 }
 0x2c8   :  { %v240_v62 = vsel %vm236_vm8, %v195_v28, %v219_v16  ;;  %v252_v28 = vmul.f32 %v3032_v57, %v3070_v6 }
 0x2c9   :  { %v256_v38 = vmul.f32 %v240_v62, %v3149_v36 }
 0x2cb   :  { %v264_v49 = vadd.f32 %v256_v38, %v248_v39 }
 0x2cf   :  { %v227_v22 = vpop.permute.xlu0 %226 }
 0x2d0   :  { %v244_v27 = vsel %vm236_vm8, %v203_v37, %v227_v22  ;;  %v49_v22 = vld [vmem:[%s3874_s2 + $0x18] sm:$0xff] }
 0x2d1   :  { %v260_v56 = vmul.f32 %v244_v27, %v3141_v31 }
 0x2d3   :  { %v268_v20 = vadd.f32 %v260_v56, %v252_v28  ;;  %v47_v28 = vld [vmem:[%s3874_s2 + $0x8] sm:$0xff] }
 0x2d7   :  { %v191_v33 = vpop.permute.xlu0 %190 }
 0x2d8   :  { %v238_v11 = vsel %vm236_vm8, %v191_v33, %v215_v19 }
 0x2df   :  { %v223_v34 = vpop.permute.xlu0 %222 }
 0x2e0   :  { %v472_v29 = vpop.permute.xlu1 %471  ;;  %v242_v0 = vsel %vm236_vm8, %v199_v58, %v223_v34 }
 0x2e1   :  { %2416 = vmatpush.xpose.msk.msra.mxu3 %vm416_vm9, %v472_v29  ;;  %v258_v31 = vmul.f32 %v242_v0, %v3166_v50  ;;  %v254_v50 = vmul.f32 %v238_v11, %v3063_v3  ;;  %v52_v11 = vld [vmem:[%s3874_s2 + $0x30] sm:$0xff] }
 0x2e3   :  { %v612_v32 = vpop.permute.xlu2 %611  ;;  %v266_v6 = vadd.f32 %v258_v31, %v250_v35  ;;  %v262_v9 = vadd.f32 %v254_v50, %v246_v59 }
 0x2e4   :  { %2417 = vmatmul.msk.f32.vlgmr.msra.gmra.mxu3 %vm416_vm9, %v263_v30  ;;  %2426 = vmatpush.xpose.msk.msrb.mxu2 %vm416_vm9, %v612_v32 }
 0x2e7   :  { %2427 = vmatmul.msk.f32.vlgmr.msrb.gmra.mxu2 %vm416_vm9, %v268_v20  ;;  %v201_v61 = vpop.permute.xlu0 %200 }
 0x314   :  { %v556_v37 = vpop.permute.xlu2 %555 }
 0x315   :  { %2422 = vmatpush.xpose.msk.msrb.mxu3 %vm416_vm9, %v556_v37  ;;  %v50_v37 = vld [vmem:[%s3874_s2 + $0x20] sm:$0xff] }
 0x318   :  { %2423 = vmatmul.msk.f32.vlgmr.msrb.gmra.mxu3 %vm416_vm9, %v266_v6 }
 0x31b   :  { %v500_v40 = vpop.permute.xlu1 %499 }
 0x31c   :  { %v584_v41 = vpop.permute.xlu2 %583  ;;  %2418 = vmatpush.xpose.msk.msrb.mxu1 %vm416_vm9, %v500_v40 }
 0x31f   :  { %2419 = vmatmul.msk.f32.vlgmr.msrb.gmra.mxu1 %vm416_vm9, %v264_v49 }
 0x320   :  { %2424 = vmatpush.xpose.msk.msra.mxu1 %vm416_vm9, %v584_v41 }
 0x323   :  { %v444_v36 = vpop.permute.xlu1 %443 }
 0x324   :  { %2414 = vmatpush.xpose.msk.msrb.mxu0 %vm416_vm9, %v444_v36 }
 0x327   :  { %2415 = vmatmul.msk.f32.vlgmr.msrb.gmra.mxu0 %vm416_vm9, %v262_v9 }
 0x32b   :  { %v225_v58 = vpop.permute.xlu1 %224 }
 0x32c   :  { %v243_v63 = vsel %vm236_vm8, %v201_v61, %v225_v58  ;;  %v53_v61 = vld [vmem:[%s3874_s2 + $0x38] sm:$0xff] }
 0x32d   :  { %v259_v1 = vmul.f32 %v243_v63, %v3133_v25 }
 0x32f   :  { %v267_v2 = vadd.f32 %v259_v1, %v251_v18  ;;  %v439_v3 = vpop.f32.mrf.mxu1  ;;  %v2612_v1 = vpack.i.bf16 %v3018_v53, %v2967_v42 }
 0x330   :  { %v638_v4 = vmul.f32 0.35355338, %v439_v3 }
 0x331   :  { %2425 = vmatmul.msk.f32.vlgmr.msra.gmra.mxu1 %vm416_vm9, %v267_v2 }
 0x332   :  { %v646_v5 = vadd.f32 %v638_v4, %v46_v8 }
 0x334   :  { %v654_v7 = vsel %vm416_vm9, %v646_v5, -inf }
 0x335   :  { %655 = vmax.xlane.f32.xlu0 %v654_v7  ;;  %v2627_v7 = vpack.i.bf16 %v3022_v55, %v3020_v54 }
 0x347   :  { %v551_v20 = vpop.f32.mrf.mxu2 }
 0x348   :  { %v642_v0 = vmul.f32 0.35355338, %v551_v20 }
 0x34a   :  { %v650_v38 = vadd.f32 %v642_v0, %v50_v37 }
 0x34c   :  { %v666_v49 = vsel %vm416_vm9, %v650_v38, -inf }
 0x367   :  { %v495_v10 = vpop.f32.mrf.mxu3 }
 0x368   :  { %v640_v14 = vmul.f32 0.35355338, %v495_v10 }
 0x36a   :  { %v648_v25 = vadd.f32 %v640_v14, %v48_v12  ;;  %v635_v40 = vpop.f32.mrf.mxu2 }
 0x36b   :  { %v645_v59 = vmul.f32 0.35355338, %v635_v40 }
 0x36c   :  { %v660_v16 = vsel %vm416_vm9, %v648_v25, -inf }
 0x36d   :  { %661 = vmax.xlane.f32.xlu0 %v660_v16  ;;  %v653_v58 = vadd.f32 %v645_v59, %v53_v61  ;;  %v2617_v59 = vpack.i.bf16 %v3010_v51, %v2975_v44 }
 0x36f   :  { %v675_v18 = vsel %vm416_vm9, %v653_v58, -inf }
 0x39b   :  { %v579_v62 = vpop.f32.mrf.mxu3 }
 0x39c   :  { %v643_v19 = vmul.f32 0.35355338, %v579_v62  ;;  %v523_v21 = vpop.f32.mrf.mxu1 }
 0x39d   :  { %v641_v17 = vmul.f32 0.35355338, %v523_v21 }
 0x39e   :  { %v3286_v27 = vadd.f32 %v643_v19, %v51_v15 }
 0x39f   :  { %v649_v45 = vadd.f32 %v641_v17, %v49_v22 }
 0x3a0   :  { %v669_v29 = vsel %vm416_vm9, %v3286_v27, -inf }
 0x3a1   :  { %670 = vmax.xlane.f32.xlu0 %v669_v29  ;;  %v663_v56 = vsel %vm416_vm9, %v649_v45, -inf }
 0x3a2   :  { %664 = vmax.xlane.f32.xlu1 %v663_v56 }
 0x3a4   :  { %v467_v30 = vpop.f32.mrf.mxu0 }
 0x3a5   :  { %v639_v32 = vmul.f32 0.35355338, %v467_v30 }
 0x3a7   :  { %v647_v33 = vadd.f32 %v639_v32, %v47_v28 }
 0x3a8   :  { %v656_v34 = vpop.xlane.xlu0 %655 }
 0x3a9   :  { %v678_v31 = vsub.f32 %v646_v5, %v656_v34  ;;  %v657_v35 = vsel %vm416_vm9, %v647_v33, -inf }
 0x3aa   :  { %658 = vmax.xlane.f32.xlu2 %v657_v35 }
 0x3ab   :  { %v686_v6 = vmul.f32 1.442695, %v678_v31 }
 0x3ad   :  { %2693 = vpow2.f32 %v686_v6 }
 0x3ae   :  { %v607_v39 = vpop.f32.mrf.mxu1 }
 0x3af   :  { %v644_v41 = vmul.f32 0.35355338, %v607_v39 }
 0x3b1   :  { %v652_v9 = vadd.f32 %v644_v41, %v52_v11 }
 0x3b2   :  { %667 = vmax.xlane.f32.xlu2 %v666_v49 }
 0x3b3   :  { %v3302_v50 = vpop.eup %2693  ;;  %v672_v63 = vsel %vm416_vm9, %v652_v9, -inf }
 0x3b4   :  { %v702_v36 = vsel %vm416_vm9, %v3302_v50, 0.0 }
 0x3b5   :  { %703 = vadd.xlane.f32.xlu1 %v702_v36  ;;  %v2622_v36 = vpack.i.bf16 %v3032_v57, %v3004_v48 }
 0x3ba   :  { %673 = vmax.xlane.f32.xlu2 %v672_v63 }
 0x3bd   :  { %676 = vmax.xlane.f32.xlu1 %v675_v18 }
 0x3d6   :  { %2613 = vrot.lane.b32.xlu1 %v2612_v1, %s2870_s13 }
 0x3e0   :  { %v662_v2 = vpop.xlane.xlu0 %661 }
 0x3e1   :  { %v680_v3 = vsub.f32 %v648_v25, %v662_v2 }
 0x3e3   :  { %v690_v8 = vmul.f32 1.442695, %v680_v3 }
 0x3e5   :  { %2695 = vpow2.f32 %v690_v8 }
 0x3eb   :  { %v3314_v4 = vpop.eup %2695 }
 0x3ec   :  { %v708_v5 = vsel %vm416_vm9, %v3314_v4, 0.0 }
 0x400   :  { %709 = vadd.xlane.f32.xlu1 %v708_v5 }
 0x414   :  { %v671_v55 = vpop.xlane.xlu0 %670 }
 0x415   :  { %v665_v53 = vpop.xlane.xlu1 %664  ;;  %v683_v17 = vsub.f32 %v3286_v27, %v671_v55 }
 0x416   :  { %v681_v62 = vsub.f32 %v649_v45, %v665_v53 }
 0x417   :  { %v696_v20 = vmul.f32 1.442695, %v683_v17 }
 0x418   :  { %v692_v54 = vmul.f32 1.442695, %v681_v62 }
 0x419   :  { %2628 = vrot.lane.b32.xlu1 %v2627_v7, %s2870_s13 }
 0x41d   :  { %v659_v10 = vpop.xlane.xlu2 %658 }
 0x41e   :  { %v679_v42 = vsub.f32 %v647_v33, %v659_v10 }
 0x420   :  { %v688_v12 = vmul.f32 1.442695, %v679_v42 }
 0x422   :  { %2697 = vpow2.f32 %v688_v12 }
 0x425   :  { %v668_v14 = vpop.xlane.xlu2 %667 }
 0x426   :  { %v682_v25 = vsub.f32 %v650_v38, %v668_v14 }
 0x428   :  { %v3321_v16 = vpop.eup %2697  ;;  %v694_v15 = vmul.f32 1.442695, %v682_v25  ;;  %v704_v19 = vpop.xlane.xlu1 %703 }
 0x429   :  { %v705_v21 = vsel %vm416_vm9, %v3321_v16, 0.0 }
 0x42a   :  { %2699 = vpow2.f32 %v694_v15  ;;  %706 = vadd.xlane.f32.xlu2 %v705_v21 }
 0x42b   :  { %2701 = vpow2.f32 %v692_v54 }
 0x42d   :  { %v674_v29 = vpop.xlane.xlu2 %673 }
 0x42e   :  { %v684_v45 = vsub.f32 %v652_v9, %v674_v29 }
 0x430   :  { %v2700_v22 = vpop.eup %2699  ;;  %v677_v56 = vpop.xlane.xlu1 %676  ;;  %v698_v34 = vmul.f32 1.442695, %v684_v45 }
 0x431   :  { %v685_v30 = vsub.f32 %v653_v58, %v677_v56  ;;  %v714_v28 = vsel %vm416_vm9, %v2700_v22, 0.0  ;;  %v2702_v33 = vpop.eup %2701 }
 0x432   :  { %715 = vadd.xlane.f32.xlu0 %v714_v28  ;;  %v711_v0 = vsel %vm416_vm9, %v2702_v33, 0.0 }
 0x433   :  { %v700_v32 = vmul.f32 1.442695, %v685_v30 }
 0x435   :  { %2703 = vpow2.f32 %v700_v32 }
 0x436   :  { %2705 = vpow2.f32 %v696_v20 }
 0x437   :  { %2707 = vpow2.f32 %v698_v34 }
 0x438   :  { %2709 = vrcp.f32 %v704_v19 }
 0x43a   :  { %712 = vadd.xlane.f32.xlu0 %v711_v0  ;;  %v2577_v0 = vld [vmem:[%s3879_s7 + $0x8] sm:$0xff] }
 0x43b   :  { %v2704_v31 = vpop.eup %2703 }
 0x43c   :  { %v723_v27 = vsel %vm416_vm9, %v2704_v31, 0.0  ;;  %v3329_v35 = vpop.eup %2705 }
 0x43d   :  { %724 = vadd.xlane.f32.xlu2 %v723_v27  ;;  %v3331_v37 = vpop.eup %2707  ;;  %v717_v6 = vsel %vm416_vm9, %v3329_v35, 0.0 }
 0x43e   :  { %v720_v38 = vsel %vm416_vm9, %v3331_v37, 0.0  ;;  %v2710_v39 = vpop.eup %2709 }
 0x43f   :  { %v734_v11 = vmul.f32 %v2710_v39, %v3302_v50 }
 0x442   :  { %718 = vadd.xlane.f32.xlu0 %v717_v6 }
 0x445   :  { %721 = vadd.xlane.f32.xlu2 %v720_v38 }
 0x448   :  { %v2614_v40 = vpop.permute.xlu1 %2613 }
 0x449   :  { %v2616_v41 = vunpack.i.h.bf16 %v2614_v40  ;;  %v2615_v49 = vunpack.i.l.bf16 %v2614_v40 }
 0x44b   :  { %763 = vmatpush.msra.mxu3 %v2615_v49  ;;  %841 = vmatpush.msra.mxu2 %v2616_v41 }
 0x44c   :  { %2428 = vmatmul.msk.f32.vlgmr.msra.gmra.mxu3 %vm416_vm9, %v734_v11 }
 0x456   :  { %2618 = vrot.lane.b32.xlu0 %v2617_v59, %s2870_s13 }
 0x45d   :  { %2623 = vrot.lane.b32.xlu2 %v2622_v36, %s2870_s13 }
 0x473   :  { %v710_v44 = vpop.xlane.xlu1 %709 }
 0x48b   :  { %v2629_v53 = vpop.permute.xlu1 %2628 }
 0x48c   :  { %v2631_v19 = vunpack.i.h.bf16 %v2629_v53  ;;  %v2630_v21 = vunpack.i.l.bf16 %v2629_v53 }
 0x49d   :  { %v707_v61 = vpop.xlane.xlu2 %706 }
 0x4a5   :  { %v716_v9 = vpop.xlane.xlu0 %715 }
 0x4ad   :  { %v713_v58 = vpop.xlane.xlu0 %712 }
 0x4ae   :  { %2711 = vrcp.f32 %v713_v58 }
 0x4af   :  { %2713 = vrcp.f32 %v716_v9 }
 0x4b0   :  { %v725_v63 = vpop.xlane.xlu2 %724 }
 0x4b1   :  { %2715 = vrcp.f32 %v725_v63 }
 0x4b2   :  { %2717 = vrcp.f32 %v710_v44 }
 0x4b3   :  { %2719 = vrcp.f32 %v707_v61 }
 0x4b4   :  { %v2712_v50 = vpop.eup %2711 }
 0x4b5   :  { %v737_v18 = vmul.f32 %v2712_v50, %v2702_v33  ;;  %v2714_v51 = vpop.eup %2713  ;;  %v719_v3 = vpop.xlane.xlu0 %718 }
 0x4b6   :  { %v738_v5 = vmul.f32 %v2714_v51, %v2700_v22  ;;  %2721 = vrcp.f32 %v719_v3  ;;  %v2794_v3 = vld [vmem:[%s3873_s1 + $0x8] sm:$0xff] }
 0x4b7   :  { %2431 = vmatmul.msk.f32.vlgmr.msra.gmra.mxu2 %vm416_vm9, %v737_v18  ;;  %v2716_v2 = vpop.eup %2715  ;;  %v2793_v18 = vld [vmem:[%s3873_s1] sm:$0xff]  ;;  %s2313_s1 = sld [smem:[#allocation4]] }
 0x4b8   :  { %v722_v1 = vpop.xlane.xlu2 %721  ;;  %v741_v7 = vmul.f32 %v2716_v2, %v2704_v31  ;;  %v2718_v10 = vpop.eup %2717  ;;  %v2576_v31 = vld [vmem:[%s3879_s7] sm:$0xff] }
 0x4b9   :  { %v2720_v42 = vpop.eup %2719  ;;  %2723 = vrcp.f32 %v722_v1  ;;  %v736_v62 = vmul.f32 %v2718_v10, %v3314_v4 }
 0x4ba   :  { %v735_v15 = vmul.f32 %v2720_v42, %v3321_v16  ;;  %v2578_v42 = vld [vmem:[%s3880_s8] sm:$0xff] }
 0x4bc   :  { %v2722_v54 = vpop.eup %2721 }
 0x4bd   :  { %v739_v22 = vmul.f32 %v2722_v54, %v3329_v35 }
 0x4bf   :  { %v2724_v55 = vpop.eup %2723 }
 0x4c0   :  { %v2624_v48 = vpop.permute.xlu2 %2623  ;;  %v740_v17 = vmul.f32 %v2724_v55, %v3331_v37 }
 0x4c1   :  { %v2626_v57 = vunpack.i.h.bf16 %v2624_v48  ;;  %v2625_v8 = vunpack.i.l.bf16 %v2624_v48 }
 0x4c3   :  { %867 = vmatpush.msrb.mxu3 %v2625_v8  ;;  %945 = vmatpush.msrb.mxu2 %v2626_v57 }
 0x4c4   :  { %2432 = vmatmul.msk.f32.vlgmr.msrb.gmra.mxu3 %vm416_vm9, %v738_v5  ;;  %2435 = vmatmul.msk.f32.vlgmr.msrb.gmra.mxu2 %vm416_vm9, %v741_v7  ;;  %v2579_v5 = vld [vmem:[%s3880_s8 + $0x8] sm:$0xff] }
 0x4c5   :  { %1008 = vmatpush.bf16.msra.mxu3 %v2577_v0 }
 0x4c8   :  { %v2619_v12 = vpop.permute.xlu0 %2618 }
 0x4c9   :  { %v2621_v14 = vunpack.i.h.bf16 %v2619_v12  ;;  %v2620_v25 = vunpack.i.l.bf16 %v2619_v12  ;;  %1009 = vmatpush.bf16.msra.mxu3 %v2576_v31  ;;  %v2583_v31 = vld [vmem:[%s3881_s9 + $0x18] sm:$0xff] }
 0x4cb   :  { %789 = vmatpush.msra.mxu0 %v2620_v25  ;;  %815 = vmatpush.msrb.mxu1 %v2621_v14 }
 0x4cc   :  { %2429 = vmatmul.msk.f32.vlgmr.msra.gmra.mxu0 %vm416_vm9, %v735_v15  ;;  %2430 = vmatmul.msk.f32.vlgmr.msrb.gmra.mxu1 %vm416_vm9, %v736_v62 }
 0x4cd   :  { %893 = vmatpush.msrb.mxu0 %v2630_v21  ;;  %919 = vmatpush.msra.mxu1 %v2631_v19 }
 0x4cf   :  { %v765_v4 = vpop.f32.mrf.mxu3  ;;  %1082 = vmatpush.bf16.msra.mxu0 %v2579_v5  ;;  %1181 = vmatpush.bf16.msrb.mxu1 %v2583_v31 }
 0x4d3   :  { %1083 = vmatpush.bf16.msra.mxu0 %v2578_v42 }
 0x4d4   :  { %2433 = vmatmul.msk.f32.vlgmr.msrb.gmra.mxu0 %vm416_vm9, %v739_v22  ;;  %2434 = vmatmul.msk.f32.vlgmr.msra.gmra.mxu1 %vm416_vm9, %v740_v17 }
 0x53a   :  { %v843_v16 = vpop.f32.mrf.mxu2 }
 0x547   :  { %v869_v28 = vpop.f32.mrf.mxu3  ;;  %v947_v45 = vpop.f32.mrf.mxu2 }
 0x549   :  { %v791_v29 = vpop.f32.mrf.mxu0  ;;  %v817_v56 = vpop.f32.mrf.mxu1 }
 0x54a   :  { %v2632_v30 = vpack.i.bf16 %v843_v16, %v817_v56 }
 0x54c   :  { %2633 = vrot.lane.b32.xlu0 %v2632_v30, %s2871_s17 }
 0x551   :  { %v895_v32 = vpop.f32.mrf.mxu0  ;;  %v921_v20 = vpop.f32.mrf.mxu1 }
 0x552   :  { %v2637_v33 = vpack.i.bf16 %v895_v32, %v869_v28  ;;  %v2642_v34 = vpack.i.bf16 %v947_v45, %v921_v20  ;;  %v2683_v28 = vld [vmem:[%s3877_s5 + $0x1] ss:$0 sm:$0xff] }
 0x554   :  { %2643 = vrot.lane.b32.xlu2 %v2642_v34, %s2872_s21  ;;  %2638 = vrot.lane.b32.xlu1 %v2637_v33, %s2873_s22 }
 0x5ae   :  { %v2644_v6 = vpop.permute.xlu2 %2643 }
 0x5af   :  { %v2646_v41 = vunpack.i.h.bf16 %v2644_v6  ;;  %v2645_v49 = vunpack.i.l.bf16 %v2644_v6 }
 0x5be   :  { %v2634_v27 = vpop.permute.xlu0 %2633 }
 0x5bf   :  { %v2636_v35 = vunpack.i.h.bf16 %v2634_v27  ;;  %v2635_v37 = vunpack.i.l.bf16 %v2634_v27 }
 0x5c1   :  { %v974_v11 = vsel %vm416_vm9, %v765_v4, %v2635_v37  ;;  %v975_v59 = vsel %vm416_vm9, %v791_v29, %v2636_v35 }
 0x5c6   :  { %v2639_v38 = vpop.permute.xlu1 %2638 }
 0x5c7   :  { %v2641_v39 = vunpack.i.h.bf16 %v2639_v38  ;;  %v2640_v40 = vunpack.i.l.bf16 %v2639_v38 }
 0x5c9   :  { %v978_v36 = vsel %vm976_vm10, %v975_v59, %v2641_v39  ;;  %v977_v9 = vsel %vm976_vm10, %v974_v11, %v2640_v40  ;;  %v2582_v40 = vld [vmem:[%s3881_s9 + $0x10] sm:$0xff]  ;;  %v2580_v59 = vld [vmem:[%s3881_s9] sm:$0xff] }
 0x5ca   :  { %v981_v61 = vsel %vm979_vm11, %v978_v36, %v2646_v41  ;;  %v980_v58 = vsel %vm979_vm11, %v977_v9, %v2645_v49  ;;  %1182 = vmatpush.bf16.msrb.mxu1 %v2582_v40  ;;  %v2581_v49 = vld [vmem:[%s3881_s9 + $0x8] sm:$0xff] }
 0x5cb   :  { %v982_v63 = vpack.c.bf16 %v981_v61, %v980_v58 }
 0x5cd   :  { %2444 = vmatmul.msk.bf16.vlgmr.msra.gmra.mxu3 %vm75_vm0, %v982_v63 }
 0x5ce   :  { %1183 = vmatpush.bf16.msrb.mxu1 %v2581_v49 }
 0x5d2   :  { %1184 = vmatpush.bf16.msrb.mxu1 %v2580_v59 }
 0x650   :  { %v1011_v50 = vpop.f32.mrf.mxu3 }
 0x651   :  { %v3375_v1 = vadd.f32 %v2793_v18, %v1011_v50 }
 0x653   :  { %v1019_v44 = vmul.f32 %v3375_v1, %v3375_v1 }
 0x655   :  { %v1021_v51 = vsel %vm75_vm0, %v1019_v44, 0.0 }
 0x656   :  { %1022 = vadd.xlane.f32.xlu0 %v1021_v51 }
 0x658   :  { %v1013_v2 = vpop.f32.mrf.mxu3 }
 0x659   :  { %v3383_v48 = vadd.f32 %v2794_v3, %v1013_v2 }
 0x65b   :  { %v1020_v57 = vmul.f32 %v3383_v48, %v3383_v48 }
 0x65d   :  { %v1024_v8 = vsel %vm75_vm0, %v1020_v57, 0.0 }
 0x65e   :  { %1025 = vadd.xlane.f32.xlu1 %v1024_v8 }
 0x6c9   :  { %v1023_v7 = vpop.xlane.xlu0 %1022 }
 0x6ca   :  { %v1027_v10 = vmul.f32 %v1023_v7, %v2949_v13 }
 0x6cc   :  { %v1029_v53 = vadd.f32 1e-06, %v1027_v10 }
 0x6ce   :  { %2725 = vrsqrt.f32 %v1029_v53  ;;  %vm1037_vm13 = vweird.f32 %v1029_v53 }
 0x6d1   :  { %v1026_v12 = vpop.xlane.xlu1 %1025 }
 0x6d2   :  { %v1028_v14 = vmul.f32 %v1026_v12, %v2949_v13 }
 0x6d4   :  { %v2726_v25 = vpop.eup %2725  ;;  %v1030_v62 = vadd.f32 1e-06, %v1028_v14 }
 0x6d5   :  { %v1032_v15 = vmul.f32 %v2726_v25, %v1029_v53  ;;  %vm1038_vm12 = vweird.f32 %v2726_v25 }
 0x6d6   :  { %2727 = vrsqrt.f32 %v1030_v62  ;;  %vm1039_vm14 = vmor %vm1037_vm13, %vm1038_vm12  ;;  %vm1047_vm1 = vweird.f32 %v1030_v62 }
 0x6d7   :  { %v1033_v19 = vmul.f32 %v2726_v25, %v1032_v15 }
 0x6d9   :  { %v1034_v21 = vmul.f32 0.5, %v1033_v19 }
 0x6db   :  { %v1035_v54 = vsub.f32 1.5, %v1034_v21 }
 0x6dc   :  { %v2728_v55 = vpop.eup %2727 }
 0x6dd   :  { %v1042_v22 = vmul.f32 %v2728_v55, %v1030_v62  ;;  %v1036_v17 = vmul.f32 %v2726_v25, %v1035_v54  ;;  %vm1048_vm15 = vweird.f32 %v2728_v55 }
 0x6de   :  { %vm1049_vm2 = vmor %vm1047_vm1, %vm1048_vm15  ;;  %vm1173_vm15 = vcmask 523264  }
 0x6df   :  { %v1043_v4 = vmul.f32 %v2728_v55, %v1042_v22  ;;  %v1040_v29 = vsel %vm1039_vm14, %v2726_v25, %v1036_v17 }
 0x6e0   :  { %v1051_v45 = vmul.f32 %v1040_v29, %v3375_v1 }
 0x6e1   :  { %v1044_v16 = vmul.f32 0.5, %v1043_v4 }
 0x6e2   :  { %v1054_v33 = vmul.f32 %v2683_v28, %v1051_v45 }
 0x6e3   :  { %v1045_v56 = vsub.f32 1.5, %v1044_v16 }
 0x6e5   :  { %v1046_v30 = vmul.f32 %v2728_v55, %v1045_v56 }
 0x6e7   :  { %v1050_v32 = vsel %vm1049_vm2, %v2728_v55, %v1046_v30 }
 0x6e8   :  { %v1052_v20 = vmul.f32 %v1050_v32, %v3383_v48 }
 0x6ea   :  { %v1055_v34 = vmul.f32 %v2683_v28, %v1052_v20  ;;  %v2584_v20 = vld [vmem:[%s3878_s6 + $0x10] sm:$0xff] }
 0x6ec   :  { %v1056_v0 = vpack.c.bf16 %v1055_v34, %v1054_v33 }
 0x6ee   :  { %2453 = vmatmul.msk.bf16.vlgmr.msra.gmra.mxu0 %vm75_vm0, %v1056_v0 }
 0x76b   :  { %v1085_v27 = vpop.f32.mrf.mxu0 }
 0x76c   :  { %1132 = vrot.lane.b32.xlu2 %v1085_v27, %s2870_s13  ;;  %v2454_v37 = vmul.f32 -1.442695, %v1085_v27 }
 0x76e   :  { %2729 = vpow2.f32 %v2454_v37 }
 0x773   :  { %v1087_v35 = vpop.f32.mrf.mxu0 }
 0x774   :  { %1134 = vrot.lane.b32.xlu2 %v1087_v35, %s2870_s13  ;;  %v2455_v6 = vmul.f32 -1.442695, %v1087_v35  ;;  %v2730_v38 = vpop.eup %2729 }
 0x775   :  { %v1096_v41 = vadd.f32 1.0, %v2730_v38 }
 0x776   :  { %2731 = vpow2.f32 %v2455_v6 }
 0x777   :  { %2733 = vrcp.f32 %v1096_v41  ;;  %vm1103_vm5 = vweird.f32 %v1096_v41  ;;  %v1109_v3 = vand.u32 2147483648, %v1096_v41  ;;  %v1107_v8 = vand.u32 2147483647, %v1096_v41 }
 0x779   :  { %v1110_v53 = vor.u32 1.1754944e-38, %v1109_v3  ;;  %vm1108_vm13 = vcmp.eq.f32.partialorder %v1107_v8, 8.507059e+37 }
 0x77c   :  { %v2732_v39 = vpop.eup %2731 }
 0x77d   :  { %v1097_v11 = vadd.f32 1.0, %v2732_v39  ;;  %v2734_v36 = vpop.eup %2733 }
 0x77e   :  { %v1099_v61 = vmul.f32 %v2734_v36, %v1096_v41  ;;  %vm1104_vm3 = vweird.f32 %v2734_v36 }
 0x77f   :  { %2735 = vrcp.f32 %v1097_v11  ;;  %v1124_v57 = vand.u32 2147483648, %v1097_v11  ;;  %vm1105_vm6 = vmor %vm1103_vm5, %vm1104_vm3  ;;  %vm1118_vm7 = vweird.f32 %v1097_v11  ;;  %v1122_v5 = vand.u32 2147483647, %v1097_v11 }
 0x780   :  { %v1100_v63 = vsub.f32 1.0, %v1099_v61 }
 0x781   :  { %v1125_v12 = vor.u32 1.1754944e-38, %v1124_v57  ;;  %vm1123_vm14 = vcmp.eq.f32.partialorder %v1122_v5, 8.507059e+37 }
 0x782   :  { %v1101_v18 = vmul.f32 %v2734_v36, %v1100_v63 }
 0x784   :  { %v1102_v51 = vadd.f32 %v2734_v36, %v1101_v18 }
 0x785   :  { %v2736_v9 = vpop.eup %2735 }
 0x786   :  { %v1114_v58 = vmul.f32 %v2736_v9, %v1097_v11  ;;  %vm1119_vm4 = vweird.f32 %v2736_v9  ;;  %v1106_v10 = vsel %vm1105_vm6, %v2734_v36, %v1102_v51 }
 0x787   :  { %vm1120_vm12 = vmor %vm1118_vm7, %vm1119_vm4  ;;  %v1111_v14 = vsel %vm1108_vm13, %v1110_v53, %v1106_v10 }
 0x788   :  { %v1115_v50 = vsub.f32 1.0, %v1114_v58  ;;  %v1128_v62 = vmul.f32 %v1111_v14, %v1085_v27 }
 0x78a   :  { %v1116_v44 = vmul.f32 %v2736_v9, %v1115_v50 }
 0x78c   :  { %v1117_v2 = vadd.f32 %v2736_v9, %v1116_v44 }
 0x78e   :  { %v1121_v42 = vsel %vm1120_vm12, %v2736_v9, %v1117_v2  ;;  %v2684_v9 = vld [vmem:[%s3877_s5 + $0x2] ss:$0 sm:$0xff] }
 0x78f   :  { %v1126_v25 = vsel %vm1123_vm14, %v1125_v12, %v1121_v42 }
 0x790   :  { %v1129_v15 = vmul.f32 %v1126_v25, %v1087_v35 }
 0x7c6   :  { %v1133_v7 = vpop.permute.xlu2 %1132 }
 0x7c7   :  { %v1138_v21 = vmul.f32 %v1133_v7, %v1128_v62 }
 0x7ce   :  { %v1135_v19 = vpop.permute.xlu2 %1134 }
 0x7cf   :  { %v1139_v54 = vmul.f32 %v1135_v19, %v1129_v15 }
 0x7d1   :  { %v1140_v55 = vpack.c.bf16 %v1139_v54, %v1138_v21 }
 0x7d3   :  { %2472 = vmatmul.msk.bf16.vlgmr.msrb.gmra.mxu1 %vm1173_vm15, %v1140_v55 }
 0x850   :  { %v1186_v22 = vpop.f32.mrf.mxu1 }
 0x851   :  { %v3418_v17 = vadd.f32 %v1186_v22, %v3375_v1  ;;  %v2585_v1 = vld [vmem:[%s3878_s6 + $0x18] sm:$0xff]  ;;  %v3521_v22 = vld [vmem:[%s3876_s4] sm:$0xff] }
 0x852   :  { %1258 = vmatpush.bf16.msra.mxu2 %v2585_v1 }
 0x853   :  { %v1194_v4 = vmul.f32 %v3418_v17, %v3418_v17 }
 0x855   :  { %v1196_v16 = vsel %vm75_vm0, %v1194_v4, 0.0 }
 0x856   :  { %1197 = vadd.xlane.f32.xlu2 %v1196_v16  ;;  %1259 = vmatpush.bf16.msra.mxu2 %v2584_v20 }
 0x858   :  { %v1188_v29 = vpop.f32.mrf.mxu1 }
 0x859   :  { %v3424_v56 = vadd.f32 %v1188_v29, %v3383_v48 }
 0x85b   :  { %v1195_v30 = vmul.f32 %v3424_v56, %v3424_v56 }
 0x85d   :  { %v1199_v28 = vsel %vm75_vm0, %v1195_v30, 0.0 }
 0x85e   :  { %1200 = vadd.xlane.f32.xlu0 %v1199_v28  ;;  %v3531_v28 = vld [vmem:[%s3876_s4 + $0x30] sm:$0xff] }
 0x8c9   :  { %v1198_v45 = vpop.xlane.xlu2 %1197 }
 0x8ca   :  { %v1202_v32 = vmul.f32 %v1198_v45, %v2949_v13 }
 0x8cc   :  { %v1204_v48 = vadd.f32 1e-06, %v1202_v32 }
 0x8ce   :  { %2737 = vrsqrt.f32 %v1204_v48  ;;  %vm1212_vm2 = vweird.f32 %v1204_v48 }
 0x8d1   :  { %v1201_v33 = vpop.xlane.xlu0 %1200 }
 0x8d2   :  { %v1203_v34 = vmul.f32 %v1201_v33, %v2949_v13 }
 0x8d4   :  { %v2738_v0 = vpop.eup %2737  ;;  %v1205_v31 = vadd.f32 1e-06, %v1203_v34 }
 0x8d5   :  { %v1207_v27 = vmul.f32 %v2738_v0, %v1204_v48  ;;  %vm1213_vm1 = vweird.f32 %v2738_v0  ;;  %v3539_v48 = vld [vmem:[%s3876_s4 + $0x10] sm:$0xff] }
 0x8d6   :  { %2739 = vrsqrt.f32 %v1205_v31  ;;  %vm1214_vm3 = vmor %vm1212_vm2, %vm1213_vm1  ;;  %vm1222_vm5 = vweird.f32 %v1205_v31 }
 0x8d7   :  { %v1208_v35 = vmul.f32 %v2738_v0, %v1207_v27 }
 0x8d9   :  { %v1209_v37 = vmul.f32 0.5, %v1208_v35 }
 0x8db   :  { %v1210_v6 = vsub.f32 1.5, %v1209_v37 }
 0x8dc   :  { %v2740_v38 = vpop.eup %2739 }
 0x8dd   :  { %v1217_v39 = vmul.f32 %v2740_v38, %v1205_v31  ;;  %v1211_v40 = vmul.f32 %v2738_v0, %v1210_v6  ;;  %vm1223_vm4 = vweird.f32 %v2740_v38 }
 0x8de   :  { %vm1224_vm6 = vmor %vm1222_vm5, %vm1223_vm4 }
 0x8df   :  { %v1218_v41 = vmul.f32 %v2740_v38, %v1217_v39  ;;  %v1215_v11 = vsel %vm1214_vm3, %v2738_v0, %v1211_v40 }
 0x8e0   :  { %v1226_v61 = vmul.f32 %v1215_v11, %v3418_v17 }
 0x8e1   :  { %v1219_v49 = vmul.f32 0.5, %v1218_v41 }
 0x8e2   :  { %v1229_v50 = vmul.f32 %v2684_v9, %v1226_v61  ;;  %v3562_v61 = vld [vmem:[%s3876_s4 + $0x20] sm:$0xff] }
 0x8e3   :  { %v1220_v59 = vsub.f32 1.5, %v1219_v49 }
 0x8e5   :  { %v1221_v36 = vmul.f32 %v2740_v38, %v1220_v59 }
 0x8e7   :  { %v1225_v58 = vsel %vm1224_vm6, %v2740_v38, %v1221_v36  ;;  %v3547_v38 = vld [vmem:[%s3876_s4 + $0x8] sm:$0xff]  ;;  %v3556_v36 = vld [vmem:[%s3876_s4 + $0x18] sm:$0xff] }
 0x8e8   :  { %v1227_v63 = vmul.f32 %v1225_v58, %v3424_v56 }
 0x8ea   :  { %v1230_v18 = vmul.f32 %v2684_v9, %v1227_v63 }
 0x8ec   :  { %v1231_v44 = vpack.c.bf16 %v1230_v18, %v1229_v50 }
 0x8ee   :  { %2485 = vmatmul.msk.bf16.vlgmr.msra.gmra.mxu2 %vm75_vm0, %v1231_v44 }
 0x971   :  { %v3443_v51 = vpop.f32.mrf.mxu2 }
 0x972   :  { %1280 = vrot.lane.b32.xlu2 %v3443_v51, %s2865_s19  ;;  %1268 = vrot.lane.b32.xlu1 %v3443_v51, %s2864_s16  ;;  %v1286_v3 = vsub.f32 0.0, %v3443_v51  ;;  %v1438_v63 = vmul.f32 %v3443_v51, %v3002_v47  ;;  %v3587_v47 = vld [vmem:[%s3876_s4 + $0x38] sm:$0xff] }
 0x979   :  { %v3449_v2 = vpop.f32.mrf.mxu2 }
 0x97a   :  { %1282 = vrot.lane.b32.xlu1 %v3449_v2, %s2865_s19  ;;  %1270 = vrot.lane.b32.xlu0 %v3449_v2, %s2864_s16  ;;  %v1287_v10 = vsub.f32 0.0, %v3449_v2 }
 0x982   :  { %1276 = vrot.lane.b32.xlu1 %v3449_v2, %s2862_s14  ;;  %1274 = vrot.lane.b32.xlu0 %v3443_v51, %s2862_s14 }
 0x98a   :  { %1406 = vrot.lane.b32.xlu1 %v3443_v51, %s2866_s20  ;;  %1382 = vrot.lane.b32.xlu0 %v1286_v3, %s2863_s15 }
 0x9cc   :  { %v3465_v57 = vpop.permute.xlu2 %1280 }
 0x9cd   :  { %1418 = vrot.lane.b32.xlu0 %v3465_v57, %s2866_s20  ;;  %v1292_v8 = vsub.f32 0.0, %v3465_v57 }
 0x9cf   :  { %1394 = vrot.lane.b32.xlu2 %v1292_v8, %s2863_s15 }
 0x9e4   :  { %v3473_v5 = vpop.permute.xlu1 %1268 }
 0x9e5   :  { %1410 = vrot.lane.b32.xlu1 %v3473_v5, %s2866_s20  ;;  %v1288_v7 = vsub.f32 0.0, %v3473_v5 }
 0x9e7   :  { %1386 = vrot.lane.b32.xlu0 %v1288_v7, %s2863_s15 }
 0x9ec   :  { %v3482_v42 = vpop.permute.xlu1 %1282  ;;  %v3484_v53 = vpop.permute.xlu0 %1270 }
 0x9ed   :  { %1384 = vrot.lane.b32.xlu1 %v1287_v10, %s2863_s15  ;;  %v1289_v12 = vsub.f32 0.0, %v3484_v53  ;;  %v1293_v14 = vsub.f32 0.0, %v3482_v42 }
 0x9ef   :  { %1388 = vrot.lane.b32.xlu2 %v1289_v12, %s2863_s15  ;;  %1412 = vrot.lane.b32.xlu0 %v3484_v53, %s2866_s20 }
 0x9f4   :  { %v3496_v25 = vpop.permute.xlu1 %1276  ;;  %v3498_v62 = vpop.permute.xlu0 %1274 }
 0x9f5   :  { %1396 = vrot.lane.b32.xlu1 %v1293_v14, %s2863_s15  ;;  %v1291_v15 = vsub.f32 0.0, %v3496_v25  ;;  %v1290_v54 = vsub.f32 0.0, %v3498_v62 }
 0x9f7   :  { %1420 = vrot.lane.b32.xlu2 %v3482_v42, %s2866_s20  ;;  %1408 = vrot.lane.b32.xlu0 %v3449_v2, %s2866_s20 }
 0x9fc   :  { %v1407_v19 = vpop.permute.xlu1 %1406  ;;  %v1383_v21 = vpop.permute.xlu0 %1382 }
 0x9fd   :  { %1392 = vrot.lane.b32.xlu1 %v1291_v15, %s2863_s15  ;;  %v1430_v55 = vsel %vm236_vm8, %v1383_v21, %v1407_v19 }
 0x9fe   :  { %v1446_v4 = vmul.f32 %v3521_v22, %v1430_v55 }
 0x9ff   :  { %1390 = vrot.lane.b32.xlu2 %v1290_v54, %s2863_s15  ;;  %1414 = vrot.lane.b32.xlu0 %v3498_v62, %s2866_s20 }
 0xa05   :  { %1462 = vrot.lane.b32.xlu1 %v1446_v4, %s2861_s30  ;;  %v1440_v4 = vmul.f32 %v3473_v5, %v3189_v52 }
 0xa07   :  { %1416 = vrot.lane.b32.xlu2 %v3496_v25, %s2866_s20  ;;  %s2314_s20 = scalar_lea.vmem [#allocation2], %s2313_s1 }
 0xa29   :  { %v1395_v16 = vpop.permute.xlu2 %1394 }
 0xa3f   :  { %v1419_v29 = vpop.permute.xlu0 %1418 }
 0xa40   :  { %v1436_v30 = vsel %vm236_vm8, %v1395_v16, %v1419_v29 }
 0xa41   :  { %v1452_v1 = vmul.f32 %v3531_v28, %v1436_v30 }
 0xa43   :  { %1474 = vrot.lane.b32.xlu1 %v1452_v1, %s2861_s30 }
 0xa49   :  { %v1389_v34 = vpop.permute.xlu2 %1388 }
 0xa51   :  { %v1421_v27 = vpop.permute.xlu2 %1420 }
 0xa57   :  { %v1411_v45 = vpop.permute.xlu1 %1410 }
 0xa59   :  { %v1387_v32 = vpop.permute.xlu0 %1386  ;;  %v1391_v49 = vpop.permute.xlu2 %1390 }
 0xa5a   :  { %v1432_v20 = vsel %vm236_vm8, %v1387_v32, %v1411_v45 }
 0xa5b   :  { %v1448_v33 = vmul.f32 %v3539_v48, %v1432_v20 }
 0xa5d   :  { %1466 = vrot.lane.b32.xlu0 %v1448_v33, %s2861_s30 }
 0xa5f   :  { %v1385_v0 = vpop.permute.xlu1 %1384 }
 0xa61   :  { %v1413_v31 = vpop.permute.xlu0 %1412  ;;  %v1417_v19 = vpop.permute.xlu2 %1416 }
 0xa62   :  { %v1433_v41 = vsel %vm236_vm8, %v1389_v34, %v1413_v31 }
 0xa63   :  { %v1449_v9 = vmul.f32 %v3556_v36, %v1433_v41 }
 0xa67   :  { %v1397_v35 = vpop.permute.xlu1 %1396 }
 0xa68   :  { %v1437_v44 = vsel %vm236_vm8, %v1397_v35, %v1421_v27  ;;  %v1445_v35 = vmul.f32 %v3482_v42, %v3199_v46 }
 0xa69   :  { %v1409_v37 = vpop.permute.xlu0 %1408 }
 0xa6a   :  { %v1431_v6 = vsel %vm236_vm8, %v1385_v0, %v1409_v37  ;;  %v2803_v0 = vld [vmem:[%s3875_s3] sm:$0xff] }
 0xa6b   :  { %v1447_v39 = vmul.f32 %v3547_v38, %v1431_v6 }
 0xa6d   :  { %1464 = vrot.lane.b32.xlu2 %v1447_v39, %s2861_s30 }
 0xa6f   :  { %v1393_v40 = vpop.permute.xlu1 %1392 }
 0xa70   :  { %v1435_v21 = vsel %vm236_vm8, %v1393_v40, %v1417_v19  ;;  %v1443_v40 = vmul.f32 %v3496_v25, %v3204_v23  ;;  %v2804_v23 = vld [vmem:[%s3875_s3 + $0x8] sm:$0xff] }
 0xa71   :  { %v1415_v11 = vpop.permute.xlu0 %1414 }
 0xa72   :  { %v1434_v59 = vsel %vm236_vm8, %v1391_v49, %v1415_v11 }
 0xa73   :  { %v1450_v58 = vmul.f32 %v3562_v61, %v1434_v59 }
 0xa75   :  { %1470 = vrot.lane.b32.xlu1 %v1450_v58, %s2861_s30  ;;  %1468 = vrot.lane.b32.xlu2 %v1449_v9, %s2861_s30 }
 0xa77   :  { %v1463_v50 = vpop.permute.xlu1 %1462 }
 0xa78   :  { %v1486_v18 = vadd.f32 %v1463_v50, %v1438_v63 }
 0xa7a   :  { %1495 = vrot.lane.b32.xlu0 %v1486_v18, %s2869_s23 }
 0xa7d   :  { %1326 = vrot.lane.b32.xlu1 %v3443_v51, %s2868_s18  ;;  %1302 = vrot.lane.b32.xlu2 %v1286_v3, %s2867_s0  ;;  %v1453_v3 = vmul.f32 %v3587_v47, %v1437_v44 }
 0xa82   :  { %1330 = vrot.lane.b32.xlu0 %v3473_v5, %s2868_s18 }
 0xa85   :  { %1308 = vrot.lane.b32.xlu1 %v1289_v12, %s2867_s0  ;;  %1306 = vrot.lane.b32.xlu2 %v1288_v7, %s2867_s0  ;;  %v3600_v7 = vld [vmem:[%s3876_s4 + $0x28] sm:$0xff] }
 0xa86   :  { %v1451_v12 = vmul.f32 %v3600_v7, %v1435_v21 }
 0xa8a   :  { %1476 = vrot.lane.b32.xlu0 %v1453_v3, %s2861_s30  ;;  %v1359_v3 = vmul.f32 %v2804_v23, %v3449_v2 }
 0xa8d   :  { %1316 = vrot.lane.b32.xlu1 %v1293_v14, %s2867_s0  ;;  %1332 = vrot.lane.b32.xlu2 %v3484_v53, %s2868_s18 }
 0xa92   :  { %1472 = vrot.lane.b32.xlu0 %v1451_v12, %s2861_s30 }
 0xa95   :  { %1328 = vrot.lane.b32.xlu1 %v3449_v2, %s2868_s18  ;;  %1314 = vrot.lane.b32.xlu2 %v1292_v8, %s2867_s0  ;;  %v1439_v8 = vmul.f32 %v3449_v2, %v3208_v26  ;;  %v1444_v26 = vmul.f32 %v3465_v57, %v3206_v24 }
 0xa9a   :  { %1338 = vrot.lane.b32.xlu0 %v3465_v57, %s2868_s18 }
 0xa9d   :  { %1340 = vrot.lane.b32.xlu2 %v3482_v42, %s2868_s18 }
 0xaa5   :  { %1304 = vrot.lane.b32.xlu2 %v1287_v10, %s2867_s0  ;;  %v1441_v10 = vmul.f32 %v3484_v53, %v3157_v43  ;;  %v1442_v43 = vmul.f32 %v3498_v62, %v3039_v60 }
 0xaad   :  { %1310 = vrot.lane.b32.xlu2 %v1290_v54, %s2867_s0 }
 0xab5   :  { %1336 = vrot.lane.b32.xlu2 %v3496_v25, %s2868_s18  ;;  %v1475_v1 = vpop.permute.xlu1 %1474 }
 0xab6   :  { %v1492_v45 = vadd.f32 %v1475_v1, %v1444_v26  ;;  %v2807_v26 = vld [vmem:[%s3875_s3 + $0x30] sm:$0xff] }
 0xac7   :  { %v1465_v14 = vpop.permute.xlu2 %1464 }
 0xac8   :  { %v1487_v55 = vadd.f32 %v1465_v14, %v1439_v8 }
 0xaca   :  { %1523 = vrot.lane.b32.xlu0 %v1487_v55, %s2869_s23  ;;  %v2805_v55 = vld [vmem:[%s3875_s3 + $0x10] sm:$0xff] }
 0xacf   :  { %v1467_v16 = vpop.permute.xlu0 %1466  ;;  %v1469_v29 = vpop.permute.xlu2 %1468 }
 0xad0   :  { %v1488_v30 = vadd.f32 %v1467_v16, %v1440_v4  ;;  %v1489_v54 = vadd.f32 %v1469_v29, %v1441_v10  ;;  %v1360_v4 = vmul.f32 %v2805_v55, %v3473_v5  ;;  %v2806_v10 = vld [vmem:[%s3875_s3 + $0x18] sm:$0xff]  ;;  %v2814_v55 = vld [vmem:[%s3874_s2 + $0x20] sm:$0xff] }
 0xad1   :  { %v1361_v16 = vmul.f32 %v2806_v10, %v3484_v53 }
 0xad2   :  { %1551 = vrot.lane.b32.xlu1 %v1488_v30, %s2869_s23  ;;  %1579 = vrot.lane.b32.xlu0 %v1489_v54, %s2869_s23 }
 0xad7   :  { %v1303_v33 = vpop.permute.xlu2 %1302 }
 0xada   :  { %1663 = vrot.lane.b32.xlu1 %v1492_v45, %s2869_s23  ;;  %v1364_v45 = vmul.f32 %v2807_v26, %v3465_v57  ;;  %v2816_v26 = vld [vmem:[%s3874_s2 + $0x18] sm:$0xff] }
 0xae2   :  { %1312 = vrot.lane.b32.xlu1 %v1291_v15, %s2867_s0  ;;  %v1358_v15 = vmul.f32 %v2803_v0, %v3443_v51 }
 0xae7   :  { %v1471_v52 = vpop.permute.xlu1 %1470 }
 0xae8   :  { %v1490_v32 = vadd.f32 %v1471_v52, %v1442_v43 }
 0xaea   :  { %1607 = vrot.lane.b32.xlu1 %v1490_v32, %s2869_s23 }
 0xaec   :  { %v1496_v20 = vpop.permute.xlu0 %1495 }
 0xaed   :  { %2486 = vmatpush.xpose.msk.msrb.mxu3 %vm416_vm9, %v1496_v20 }
 0xaef   :  { %v1327_v34 = vpop.permute.xlu1 %1326 }
 0xaf0   :  { %v1350_v24 = vsel %vm236_vm8, %v1303_v33, %v1327_v34  ;;  %v2808_v34 = vld [vmem:[%s3875_s3 + $0x38] sm:$0xff] }
 0xaf1   :  { %v1366_v31 = vmul.f32 %v3521_v22, %v1350_v24  ;;  %v1307_v22 = vpop.permute.xlu2 %1306  ;;  %v1365_v24 = vmul.f32 %v2808_v34, %v3482_v42  ;;  %v2817_v34 = vld [vmem:[%s3874_s2 + $0x30] sm:$0xff] }
 0xaf3   :  { %v1374_v60 = vadd.f32 %v1366_v31, %v1358_v15 }
 0xaf4   :  { %v1331_v27 = vpop.permute.xlu0 %1330 }
 0xaf5   :  { %2487 = vmatmul.msk.f32.vlgmr.msrb.gmra.mxu3 %vm416_vm9, %v1374_v60  ;;  %v1352_v12 = vsel %vm236_vm8, %v1307_v22, %v1331_v27 }
 0xaf6   :  { %v1368_v14 = vmul.f32 %v3539_v48, %v1352_v12 }
 0xaf7   :  { %v1309_v11 = vpop.permute.xlu1 %1308 }
 0xaf8   :  { %v1376_v48 = vadd.f32 %v1368_v14, %v1360_v4 }
 0xaf9   :  { %v1333_v49 = vpop.permute.xlu2 %1332 }
 0xafa   :  { %v1353_v8 = vsel %vm236_vm8, %v1309_v11, %v1333_v49 }
 0xafc   :  { %v1477_v37 = vpop.permute.xlu0 %1476 }
 0xafd   :  { %v1493_v6 = vadd.f32 %v1477_v37, %v1445_v35 }
 0xaff   :  { %1691 = vrot.lane.b32.xlu0 %v1493_v6, %s2869_s23  ;;  %v1317_v9 = vpop.permute.xlu1 %1316 }
 0xb01   :  { %v1315_v59 = vpop.permute.xlu2 %1314 }
 0xb04   :  { %v1473_v39 = vpop.permute.xlu0 %1472 }
 0xb05   :  { %v1491_v41 = vadd.f32 %v1473_v39, %v1443_v40  ;;  %v2810_v40 = vld [vmem:[%s3875_s3 + $0x20] sm:$0xff] }
 0xb07   :  { %1334 = vrot.lane.b32.xlu0 %v3498_v62, %s2868_s18  ;;  %v1329_v58 = vpop.permute.xlu1 %1328 }
 0xb09   :  { %v1341_v46 = vpop.permute.xlu2 %1340 }
 0xb0a   :  { %v1357_v33 = vsel %vm236_vm8, %v1317_v9, %v1341_v46  ;;  %v2811_v46 = vld [vmem:[%s3875_s3 + $0x28] sm:$0xff] }
 0xb0c   :  { %v1339_v63 = vpop.permute.xlu0 %1338 }
 0xb0d   :  { %v1356_v54 = vsel %vm236_vm8, %v1315_v59, %v1339_v63 }
 0xb0e   :  { %v1372_v1 = vmul.f32 %v3531_v28, %v1356_v54  ;;  %v1373_v28 = vmul.f32 %v3587_v47, %v1357_v33  ;;  %v2809_v47 = vld [vmem:[%s3874_s2] sm:$0xff] }
 0xb0f   :  { %1635 = vrot.lane.b32.xlu0 %v1491_v41, %s2869_s23  ;;  %v1362_v41 = vmul.f32 %v2810_v40, %v3498_v62  ;;  %v2818_v40 = vld [vmem:[%s3874_s2 + $0x38] sm:$0xff] }
 0xb10   :  { %v1380_v52 = vadd.f32 %v1372_v1, %v1364_v45  ;;  %v1381_v31 = vadd.f32 %v1373_v28, %v1365_v24 }
 0xb11   :  { %v1305_v50 = vpop.permute.xlu2 %1304 }
 0xb12   :  { %v1351_v18 = vsel %vm236_vm8, %v1305_v50, %v1329_v58  ;;  %v1363_v58 = vmul.f32 %v2811_v46, %v3496_v25 }
 0xb13   :  { %v1367_v44 = vmul.f32 %v3547_v38, %v1351_v18  ;;  %v1369_v38 = vmul.f32 %v3556_v36, %v1353_v8 }
 0xb15   :  { %v1375_v21 = vadd.f32 %v1367_v44, %v1359_v3  ;;  %v1377_v36 = vadd.f32 %v1369_v38, %v1361_v16 }
 0xb19   :  { %v1311_v0 = vpop.permute.xlu2 %1310 }
 0xb21   :  { %v1337_v6 = vpop.permute.xlu2 %1336 }
 0xb3c   :  { %v1524_v19 = vpop.permute.xlu0 %1523 }
 0xb3d   :  { %2488 = vmatpush.xpose.msk.msrb.mxu0 %vm416_vm9, %v1524_v19 }
 0xb40   :  { %2489 = vmatmul.msk.f32.vlgmr.msrb.gmra.mxu0 %vm416_vm9, %v1375_v21  ;;  %v2813_v21 = vld [vmem:[%s3874_s2 + $0x10] sm:$0xff] }
 0xb44   :  { %v1580_v29 = vpop.permute.xlu0 %1579  ;;  %v1552_v30 = vpop.permute.xlu1 %1551 }
 0xb45   :  { %2490 = vmatpush.xpose.msk.msrb.mxu2 %vm416_vm9, %v1552_v30  ;;  %2492 = vmatpush.xpose.msk.msra.mxu3 %vm416_vm9, %v1580_v29 }
 0xb48   :  { %2491 = vmatmul.msk.f32.vlgmr.msrb.gmra.mxu2 %vm416_vm9, %v1376_v48  ;;  %2493 = vmatmul.msk.f32.vlgmr.msra.gmra.mxu3 %vm416_vm9, %v1377_v36  ;;  %v2815_v48 = vld [vmem:[%s3874_s2 + $0x28] sm:$0xff] }
 0xb4c   :  { %v1664_v43 = vpop.permute.xlu1 %1663 }
 0xb4d   :  { %2498 = vmatpush.xpose.msk.msra.mxu2 %vm416_vm9, %v1664_v43 }
 0xb50   :  { %2499 = vmatmul.msk.f32.vlgmr.msra.gmra.mxu2 %vm416_vm9, %v1380_v52 }
 0xb54   :  { %v1313_v32 = vpop.permute.xlu1 %1312 }
 0xb55   :  { %v1355_v49 = vsel %vm236_vm8, %v1313_v32, %v1337_v6 }
 0xb56   :  { %v1371_v9 = vmul.f32 %v3600_v7, %v1355_v49  ;;  %v2812_v7 = vld [vmem:[%s3874_s2 + $0x8] sm:$0xff]  ;;  %v2647_v49 = vpack.i.bf16 %v3484_v53, %v3473_v5 }
 0xb5c   :  { %v1608_v20 = vpop.permute.xlu1 %1607 }
 0xb5d   :  { %2494 = vmatpush.xpose.msk.msra.mxu0 %vm416_vm9, %v1608_v20 }
 0xb71   :  { %v1692_v15 = vpop.permute.xlu0 %1691 }
 0xb72   :  { %2500 = vmatpush.xpose.msk.msrb.mxu3 %vm416_vm9, %v1692_v15 }
 0xb75   :  { %2501 = vmatmul.msk.f32.vlgmr.msrb.gmra.mxu3 %vm416_vm9, %v1381_v31 }
 0xb78   :  { %v1519_v60 = vpop.f32.mrf.mxu3 }
 0xb79   :  { %v1718_v27 = vmul.f32 0.35355338, %v1519_v60  ;;  %v1335_v35 = vpop.permute.xlu0 %1334 }
 0xb7a   :  { %v1354_v37 = vsel %vm236_vm8, %v1311_v0, %v1335_v35 }
 0xb7b   :  { %v1726_v39 = vadd.f32 %v2809_v47, %v1718_v27  ;;  %v1370_v22 = vmul.f32 %v3562_v61, %v1354_v37  ;;  %v1379_v61 = vadd.f32 %v1371_v9, %v1363_v58 }
 0xb7d   :  { %v1378_v11 = vadd.f32 %v1370_v22, %v1362_v41  ;;  %v1734_v59 = vsel %vm416_vm9, %v1726_v39, -inf }
 0xb7e   :  { %1735 = vmax.xlane.f32.xlu0 %v1734_v59 }
 0xb7f   :  { %2495 = vmatmul.msk.f32.vlgmr.msra.gmra.mxu0 %vm416_vm9, %v1378_v11 }
 0xb81   :  { %v1636_v63 = vpop.permute.xlu0 %1635 }
 0xb82   :  { %2496 = vmatpush.xpose.msk.msra.mxu1 %vm416_vm9, %v1636_v63 }
 0xb85   :  { %2497 = vmatmul.msk.f32.vlgmr.msra.gmra.mxu1 %vm416_vm9, %v1379_v61 }
 0xbbd   :  { %v1547_v50 = vpop.f32.mrf.mxu0 }
 0xbbe   :  { %v1719_v18 = vmul.f32 0.35355338, %v1547_v50 }
 0xbc0   :  { %v1727_v44 = vadd.f32 %v2812_v7, %v1719_v18 }
 0xbc2   :  { %v1737_v23 = vsel %vm416_vm9, %v1727_v44, -inf }
 0xbc3   :  { %1738 = vmax.xlane.f32.xlu2 %v1737_v23 }
 0xbcb   :  { %v1575_v3 = vpop.f32.mrf.mxu2  ;;  %v1603_v30 = vpop.f32.mrf.mxu3 }
 0xbcc   :  { %v1720_v19 = vmul.f32 0.35355338, %v1575_v3  ;;  %v1721_v54 = vmul.f32 0.35355338, %v1603_v30  ;;  %v2652_v30 = vpack.i.bf16 %v3449_v2, %v3443_v51 }
 0xbce   :  { %v1728_v12 = vadd.f32 %v2813_v21, %v1720_v19  ;;  %v1729_v45 = vadd.f32 %v2816_v26, %v1721_v54 }
 0xbd0   :  { %v1740_v8 = vsel %vm416_vm9, %v1728_v12, -inf  ;;  %v1743_v33 = vsel %vm416_vm9, %v1729_v45, -inf }
 0xbd1   :  { %1741 = vmax.xlane.f32.xlu2 %v1740_v8 }
 0xbd3   :  { %v1687_v52 = vpop.f32.mrf.mxu2 }
 0xbd4   :  { %v1724_v20 = vmul.f32 0.35355338, %v1687_v52 }
 0xbd6   :  { %v1732_v24 = vadd.f32 %v2817_v34, %v1724_v20 }
 0xbd8   :  { %v1752_v0 = vsel %vm416_vm9, %v1732_v24, -inf }
 0xbf1   :  { %v1736_v43 = vpop.xlane.xlu0 %1735 }
 0xbf2   :  { %v1758_v32 = vsub.f32 %v1726_v39, %v1736_v43 }
 0xbf4   :  { %v1766_v28 = vmul.f32 1.442695, %v1758_v32 }
 0xbf6   :  { %2741 = vpow2.f32 %v1766_v28 }
 0xbf8   :  { %v1715_v37 = vpop.f32.mrf.mxu3 }
 0xbf9   :  { %v1725_v47 = vmul.f32 0.35355338, %v1715_v37 }
 0xbfb   :  { %v1733_v41 = vadd.f32 %v2818_v40, %v1725_v47 }
 0xbfc   :  { %v1631_v14 = vpop.f32.mrf.mxu0  ;;  %v3739_v15 = vpop.eup %2741 }
 0xbfd   :  { %v1722_v38 = vmul.f32 0.35355338, %v1631_v14  ;;  %v1782_v31 = vsel %vm416_vm9, %v3739_v15, 0.0  ;;  %v1755_v22 = vsel %vm416_vm9, %v1733_v41, -inf }
 0xbff   :  { %v1730_v4 = vadd.f32 %v2814_v55, %v1722_v38 }
 0xc01   :  { %v1746_v10 = vsel %vm416_vm9, %v1730_v4, -inf }
 0xc02   :  { %v1659_v16 = vpop.f32.mrf.mxu1  ;;  %1747 = vmax.xlane.f32.xlu2 %v1746_v10 }
 0xc03   :  { %v1723_v29 = vmul.f32 0.35355338, %v1659_v16 }
 0xc05   :  { %v1731_v36 = vadd.f32 %v2815_v48, %v1723_v29  ;;  %v2662_v29 = vpack.i.bf16 %v3496_v25, %v3498_v62  ;;  %v2657_v25 = vpack.i.bf16 %v3482_v42, %v3465_v57 }
 0xc07   :  { %v1749_v1 = vsel %vm416_vm9, %v1731_v36, -inf }
 0xc08   :  { %1750 = vmax.xlane.f32.xlu1 %v1749_v1 }
 0xc10   :  { %1744 = vmax.xlane.f32.xlu1 %v1743_v33 }
 0xc18   :  { %1753 = vmax.xlane.f32.xlu1 %v1752_v0 }
 0xc20   :  { %1783 = vadd.xlane.f32.xlu1 %v1782_v31 }
 0xc36   :  { %v1739_v60 = vpop.xlane.xlu2 %1738 }
 0xc37   :  { %v1759_v27 = vsub.f32 %v1727_v44, %v1739_v60 }
 0xc39   :  { %v1768_v35 = vmul.f32 1.442695, %v1759_v27 }
 0xc3b   :  { %2743 = vpow2.f32 %v1768_v35 }
 0xc41   :  { %v3743_v6 = vpop.eup %2743 }
 0xc42   :  { %v1785_v39 = vsel %vm416_vm9, %v3743_v6, 0.0 }
 0xc43   :  { %1786 = vadd.xlane.f32.xlu0 %v1785_v39 }
 0xc44   :  { %v1742_v11 = vpop.xlane.xlu2 %1741 }
 0xc45   :  { %v1760_v46 = vsub.f32 %v1728_v12, %v1742_v11 }
 0xc47   :  { %v1770_v63 = vmul.f32 1.442695, %v1760_v46 }
 0xc4b   :  { %1756 = vmax.xlane.f32.xlu0 %v1755_v22 }
 0xc5f   :  { %2648 = vrot.lane.b32.xlu0 %v2647_v49, %s2870_s13 }
 0xc75   :  { %v1748_v59 = vpop.xlane.xlu2 %1747 }
 0xc76   :  { %v1762_v9 = vsub.f32 %v1730_v4, %v1748_v59 }
 0xc78   :  { %v1774_v58 = vmul.f32 1.442695, %v1762_v9 }
 0xc7a   :  { %2745 = vpow2.f32 %v1774_v58 }
 0xc7b   :  { %v1751_v61 = vpop.xlane.xlu1 %1750  ;;  %2747 = vpow2.f32 %v1770_v63 }
 0xc7c   :  { %v1763_v50 = vsub.f32 %v1731_v36, %v1751_v61 }
 0xc7e   :  { %v1776_v18 = vmul.f32 1.442695, %v1763_v50 }
 0xc80   :  { %v3754_v7 = vpop.eup %2745  ;;  %2749 = vpow2.f32 %v1776_v18 }
 0xc81   :  { %v1794_v44 = vsel %vm416_vm9, %v3754_v7, 0.0  ;;  %v2748_v23 = vpop.eup %2747 }
 0xc82   :  { %1795 = vadd.xlane.f32.xlu2 %v1794_v44  ;;  %v1788_v12 = vsel %vm416_vm9, %v2748_v23, 0.0 }
 0xc83   :  { %v1745_v5 = vpop.xlane.xlu1 %1744 }
 0xc84   :  { %v1761_v53 = vsub.f32 %v1729_v45, %v1745_v5 }
 0xc86   :  { %v3758_v3 = vpop.eup %2749  ;;  %v1772_v19 = vmul.f32 1.442695, %v1761_v53 }
 0xc87   :  { %v1797_v21 = vsel %vm416_vm9, %v3758_v3, 0.0 }
 0xc88   :  { %2751 = vpow2.f32 %v1772_v19  ;;  %1798 = vadd.xlane.f32.xlu1 %v1797_v21 }
 0xc89   :  { %1789 = vadd.xlane.f32.xlu0 %v1788_v12 }
 0xc8b   :  { %v1754_v8 = vpop.xlane.xlu1 %1753 }
 0xc8c   :  { %v1764_v14 = vsub.f32 %v1732_v24, %v1754_v8 }
 0xc8e   :  { %v2752_v38 = vpop.eup %2751  ;;  %v1778_v55 = vmul.f32 1.442695, %v1764_v14  ;;  %v2587_v14 = vld [vmem:[%s3879_s7 + $0x18] sm:$0xff] }
 0xc8f   :  { %v1791_v4 = vsel %vm416_vm9, %v2752_v38, 0.0 }
 0xc90   :  { %2753 = vpow2.f32 %v1778_v55  ;;  %1792 = vadd.xlane.f32.xlu2 %v1791_v4 }
 0xc93   :  { %v1784_v28 = vpop.xlane.xlu1 %1783 }
 0xc96   :  { %v3764_v10 = vpop.eup %2753 }
 0xc97   :  { %v1800_v16 = vsel %vm416_vm9, %v3764_v10, 0.0 }
 0xc98   :  { %1801 = vadd.xlane.f32.xlu2 %v1800_v16 }
 0xc9d   :  { %2663 = vrot.lane.b32.xlu0 %v2662_v29, %s2870_s13 }
 0xcb0   :  { %2653 = vrot.lane.b32.xlu2 %v2652_v30, %s2870_s13 }
 0xcb6   :  { %v1787_v48 = vpop.xlane.xlu0 %1786 }
 0xcbe   :  { %v1757_v36 = vpop.xlane.xlu0 %1756 }
 0xcbf   :  { %v1765_v54 = vsub.f32 %v1733_v41, %v1757_v36 }
 0xcc1   :  { %v1780_v1 = vmul.f32 1.442695, %v1765_v54 }
 0xcc3   :  { %2755 = vpow2.f32 %v1780_v1 }
 0xcc9   :  { %v2756_v26 = vpop.eup %2755 }
 0xcca   :  { %v1803_v45 = vsel %vm416_vm9, %v2756_v26, 0.0 }
 0xccb   :  { %1804 = vadd.xlane.f32.xlu1 %v1803_v45 }
 0xcd1   :  { %v2649_v43 = vpop.permute.xlu0 %2648 }
 0xcd2   :  { %v2651_v52 = vunpack.i.h.bf16 %v2649_v43  ;;  %v2650_v32 = vunpack.i.l.bf16 %v2649_v43 }
 0xcd4   :  { %1895 = vmatpush.msrb.mxu2 %v2650_v32  ;;  %1921 = vmatpush.msra.mxu3 %v2651_v52 }
 0xce4   :  { %2658 = vrot.lane.b32.xlu1 %v2657_v25, %s2870_s13 }
 0xcf5   :  { %v1796_v51 = vpop.xlane.xlu2 %1795 }
 0xcfb   :  { %v1799_v42 = vpop.xlane.xlu1 %1798 }
 0xcfc   :  { %v1790_v2 = vpop.xlane.xlu0 %1789 }
 0xcfd   :  { %2757 = vrcp.f32 %v1790_v2 }
 0xd03   :  { %v2758_v62 = vpop.eup %2757  ;;  %v1793_v20 = vpop.xlane.xlu2 %1792 }
 0xd04   :  { %v1816_v33 = vmul.f32 %v2758_v62, %v2748_v23  ;;  %2759 = vrcp.f32 %v1793_v20 }
 0xd05   :  { %2761 = vrcp.f32 %v1784_v28 }
 0xd06   :  { %2504 = vmatmul.msk.f32.vlgmr.msrb.gmra.mxu2 %vm416_vm9, %v1816_v33  ;;  %2763 = vrcp.f32 %v1787_v48 }
 0xd07   :  { %2765 = vrcp.f32 %v1796_v51 }
 0xd08   :  { %2767 = vrcp.f32 %v1799_v42  ;;  %v2588_v42 = vld [vmem:[%s3880_s8 + $0x10] sm:$0xff] }
 0xd0a   :  { %v2760_v34 = vpop.eup %2759 }
 0xd0b   :  { %v1817_v24 = vmul.f32 %v2760_v34, %v2752_v38  ;;  %v1802_v0 = vpop.xlane.xlu2 %1801  ;;  %v2762_v57 = vpop.eup %2761  ;;  %v2586_v38 = vld [vmem:[%s3879_s7 + $0x10] sm:$0xff] }
 0xd0c   :  { %v2764_v31 = vpop.eup %2763  ;;  %v1814_v47 = vmul.f32 %v2762_v57, %v3739_v15  ;;  %2769 = vrcp.f32 %v1802_v0 }
 0xd0d   :  { %2505 = vmatmul.msk.f32.vlgmr.msra.gmra.mxu3 %vm416_vm9, %v1817_v24  ;;  %v1815_v39 = vmul.f32 %v2764_v31, %v3743_v6  ;;  %v2766_v22 = vpop.eup %2765 }
 0xd0e   :  { %v2768_v49 = vpop.eup %2767  ;;  %v1818_v11 = vmul.f32 %v2766_v22, %v3754_v7 }
 0xd0f   :  { %v2664_v60 = vpop.permute.xlu0 %2663  ;;  %v1819_v59 = vmul.f32 %v2768_v49, %v3758_v3 }
 0xd10   :  { %v2666_v40 = vunpack.i.h.bf16 %v2664_v60  ;;  %v2665_v41 = vunpack.i.l.bf16 %v2664_v60 }
 0xd12   :  { %v2770_v6 = vpop.eup %2769 }
 0xd13   :  { %v2654_v27 = vpop.permute.xlu2 %2653  ;;  %v1820_v61 = vmul.f32 %v2770_v6, %v3764_v10 }
 0xd14   :  { %v2656_v35 = vunpack.i.h.bf16 %v2654_v27  ;;  %v2655_v37 = vunpack.i.l.bf16 %v2654_v27 }
 0xd16   :  { %1843 = vmatpush.msrb.mxu0 %v2655_v37  ;;  %1869 = vmatpush.msrb.mxu1 %v2656_v35 }
 0xd17   :  { %2502 = vmatmul.msk.f32.vlgmr.msrb.gmra.mxu0 %vm416_vm9, %v1814_v47  ;;  %2503 = vmatmul.msk.f32.vlgmr.msrb.gmra.mxu1 %vm416_vm9, %v1815_v39 }
 0xd18   :  { %1947 = vmatpush.msra.mxu0 %v2665_v41  ;;  %1973 = vmatpush.msra.mxu1 %v2666_v40 }
 0xd1a   :  { %2087 = vmatpush.bf16.msrb.mxu0 %v2587_v14  ;;  %v2591_v14 = vld [vmem:[%s3881_s9 + $0x28] sm:$0xff] }
 0xd1e   :  { %2088 = vmatpush.bf16.msrb.mxu0 %v2586_v38 }
 0xd1f   :  { %2506 = vmatmul.msk.f32.vlgmr.msra.gmra.mxu0 %vm416_vm9, %v1818_v11  ;;  %2507 = vmatmul.msk.f32.vlgmr.msra.gmra.mxu1 %vm416_vm9, %v1819_v59 }
 0xd3e   :  { %v1805_v15 = vpop.xlane.xlu1 %1804 }
 0xd3f   :  { %2771 = vrcp.f32 %v1805_v15 }
 0xd45   :  { %v2772_v9 = vpop.eup %2771 }
 0xd46   :  { %v1821_v50 = vmul.f32 %v2772_v9, %v2756_v26 }
 0xd56   :  { %v2659_v46 = vpop.permute.xlu1 %2658 }
 0xd57   :  { %v2661_v58 = vunpack.i.h.bf16 %v2659_v46  ;;  %v2660_v63 = vunpack.i.l.bf16 %v2659_v46  ;;  %v2685_v46 = vld [vmem:[%s3877_s5 + $0x3] ss:$0 sm:$0xff] }
 0xd59   :  { %1999 = vmatpush.msra.mxu2 %v2660_v63  ;;  %2025 = vmatpush.msrb.mxu3 %v2661_v58 }
 0xd5a   :  { %2508 = vmatmul.msk.f32.vlgmr.msra.gmra.mxu2 %vm416_vm9, %v1820_v61  ;;  %2509 = vmatmul.msk.f32.vlgmr.msrb.gmra.mxu3 %vm416_vm9, %v1821_v50 }
 0xd89   :  { %v1897_v18 = vpop.f32.mrf.mxu2 }
 0xd90   :  { %v1923_v7 = vpop.f32.mrf.mxu3 }
 0xd91   :  { %v2672_v44 = vpack.i.bf16 %v1923_v7, %v1897_v18 }
 0xd93   :  { %2673 = vrot.lane.b32.xlu0 %v2672_v44, %s2871_s17 }
 0xd94   :  { %v1845_v5 = vpop.f32.mrf.mxu0  ;;  %v1871_v53 = vpop.f32.mrf.mxu1 }
 0xd9c   :  { %v1949_v23 = vpop.f32.mrf.mxu0  ;;  %v1975_v3 = vpop.f32.mrf.mxu1 }
 0xd9d   :  { %v2667_v19 = vpack.i.bf16 %v1975_v3, %v1949_v23 }
 0xd9f   :  { %2668 = vrot.lane.b32.xlu2 %v2667_v19, %s2873_s22 }
 0xddd   :  { %v2001_v21 = vpop.f32.mrf.mxu2  ;;  %v2027_v12 = vpop.f32.mrf.mxu3 }
 0xdde   :  { %v2677_v8 = vpack.i.bf16 %v2027_v12, %v2001_v21  ;;  %v2592_v12 = vld [vmem:[%s3881_s9 + $0x30] sm:$0xff] }
 0xde0   :  { %2678 = vrot.lane.b32.xlu0 %v2677_v8, %s2872_s21 }
 0xdf9   :  { %v2669_v16 = vpop.permute.xlu2 %2668 }
 0xdfa   :  { %v2671_v48 = vunpack.i.h.bf16 %v2669_v16  ;;  %v2670_v36 = vunpack.i.l.bf16 %v2669_v16 }
 0xe05   :  { %v2674_v55 = vpop.permute.xlu0 %2673 }
 0xe06   :  { %v2676_v4 = vunpack.i.h.bf16 %v2674_v55  ;;  %v2675_v10 = vunpack.i.l.bf16 %v2674_v55  ;;  %v2590_v55 = vld [vmem:[%s3881_s9 + $0x20] sm:$0xff] }
 0xe08   :  { %v2054_v29 = vsel %vm416_vm9, %v1845_v5, %v2675_v10  ;;  %v2055_v30 = vsel %vm416_vm9, %v1871_v53, %v2676_v4  ;;  %v2593_v5 = vld [vmem:[%s3881_s9 + $0x38] sm:$0xff] }
 0xe09   :  { %v2056_v45 = vsel %vm976_vm10, %v2054_v29, %v2670_v36  ;;  %v2057_v43 = vsel %vm976_vm10, %v2055_v30, %v2671_v48  ;;  %2261 = vmatpush.bf16.msrb.mxu2 %v2593_v5 }
 0xe0d   :  { %2262 = vmatpush.bf16.msrb.mxu2 %v2592_v12 }
 0xe11   :  { %2263 = vmatpush.bf16.msrb.mxu2 %v2591_v14 }
 0xe15   :  { %2264 = vmatpush.bf16.msrb.mxu2 %v2590_v55 }
 0xe52   :  { %v2679_v54 = vpop.permute.xlu0 %2678 }
 0xe53   :  { %v2681_v1 = vunpack.i.h.bf16 %v2679_v54  ;;  %v2680_v26 = vunpack.i.l.bf16 %v2679_v54 }
 0xe55   :  { %v2059_v52 = vsel %vm979_vm11, %v2057_v43, %v2681_v1  ;;  %v2058_v32 = vsel %vm979_vm11, %v2056_v45, %v2680_v26 }
 0xe56   :  { %v2060_v25 = vpack.c.bf16 %v2059_v52, %v2058_v32 }
 0xe58   :  { %2522 = vmatmul.msk.bf16.vlgmr.msrb.gmra.mxu0 %vm75_vm0, %v2060_v25 }
 0xed5   :  { %v2090_v51 = vpop.f32.mrf.mxu0 }
 0xed6   :  { %v3808_v2 = vadd.f32 %v2090_v51, %v3418_v17  ;;  %v2589_v17 = vld [vmem:[%s3880_s8 + $0x18] sm:$0xff] }
 0xed7   :  { %2162 = vmatpush.bf16.msrb.mxu1 %v2589_v17 }
 0xed8   :  { %v2098_v62 = vmul.f32 %v3808_v2, %v3808_v2 }
 0xeda   :  { %v2100_v20 = vsel %vm75_vm0, %v2098_v62, 0.0 }
 0xedb   :  { %2101 = vadd.xlane.f32.xlu1 %v2100_v20  ;;  %2163 = vmatpush.bf16.msrb.mxu1 %v2588_v42 }
 0xedd   :  { %v2092_v33 = vpop.f32.mrf.mxu0 }
 0xede   :  { %v3814_v28 = vadd.f32 %v2092_v33, %v3424_v56 }
 0xee0   :  { %v2099_v34 = vmul.f32 %v3814_v28, %v3814_v28 }
 0xee2   :  { %v2103_v24 = vsel %vm75_vm0, %v2099_v34, 0.0 }
 0xee3   :  { %2104 = vadd.xlane.f32.xlu2 %v2103_v24 }
 0xf4e   :  { %v2102_v0 = vpop.xlane.xlu1 %2101 }
 0xf4f   :  { %v2106_v57 = vmul.f32 %v2102_v0, %v2949_v13 }
 0xf51   :  { %v2108_v56 = vadd.f32 1e-06, %v2106_v57 }
 0xf53   :  { %2773 = vrsqrt.f32 %v2108_v56  ;;  %vm2116_vm9 = vweird.f32 %v2108_v56 }
 0xf56   :  { %v2105_v31 = vpop.xlane.xlu2 %2104 }
 0xf57   :  { %v2107_v60 = vmul.f32 %v2105_v31, %v2949_v13 }
 0xf59   :  { %v2774_v27 = vpop.eup %2773  ;;  %v2109_v35 = vadd.f32 1e-06, %v2107_v60 }
 0xf5a   :  { %v2111_v37 = vmul.f32 %v2774_v27, %v2108_v56  ;;  %vm2117_vm8 = vweird.f32 %v2774_v27 }
 0xf5b   :  { %2775 = vrsqrt.f32 %v2109_v35  ;;  %vm2118_vm10 = vmor %vm2116_vm9, %vm2117_vm8  ;;  %vm2126_vm7 = vweird.f32 %v2109_v35 }
 0xf5c   :  { %v2112_v47 = vmul.f32 %v2774_v27, %v2111_v37 }
 0xf5e   :  { %v2113_v39 = vmul.f32 0.5, %v2112_v47 }
 0xf60   :  { %v2114_v40 = vsub.f32 1.5, %v2113_v39 }
 0xf61   :  { %v2776_v41 = vpop.eup %2775 }
 0xf62   :  { %v2121_v22 = vmul.f32 %v2776_v41, %v2109_v35  ;;  %v2115_v49 = vmul.f32 %v2774_v27, %v2114_v40  ;;  %vm2127_vm11 = vweird.f32 %v2776_v41 }
 0xf63   :  { %vm2128_vm12 = vmor %vm2126_vm7, %vm2127_vm11 }
 0xf64   :  { %v2122_v11 = vmul.f32 %v2776_v41, %v2121_v22  ;;  %v2119_v15 = vsel %vm2118_vm10, %v2774_v27, %v2115_v49 }
 0xf65   :  { %v2130_v58 = vmul.f32 %v2119_v15, %v3808_v2 }
 0xf66   :  { %v2123_v59 = vmul.f32 0.5, %v2122_v11 }
 0xf67   :  { %v2133_v50 = vmul.f32 %v2685_v46, %v2130_v58 }
 0xf68   :  { %v2124_v6 = vsub.f32 1.5, %v2123_v59  ;;  %v2595_v59 = vld [vmem:[%s3882_s10 + $0x8] sm:$0xff] }
 0xf69   :  { %2351 = vmatpush.bf16.msra.mxu3 %v2595_v59 }
 0xf6a   :  { %v2125_v9 = vmul.f32 %v2776_v41, %v2124_v6 }
 0xf6c   :  { %v2129_v63 = vsel %vm2128_vm12, %v2776_v41, %v2125_v9  ;;  %vm2323_vm12 = vcmask 1040384  }
 0xf6d   :  { %v2131_v61 = vmul.f32 %v2129_v63, %v3814_v28 }
 0xf6f   :  { %v2134_v18 = vmul.f32 %v2685_v46, %v2131_v61 }
 0xf71   :  { %v2135_v7 = vpack.c.bf16 %v2134_v18, %v2133_v50 }
 0xf73   :  { %2535 = vmatmul.msk.bf16.vlgmr.msrb.gmra.mxu1 %vm75_vm0, %v2135_v7 }
 0xff0   :  { %v2165_v44 = vpop.f32.mrf.mxu1 }
 0xff1   :  { %2212 = vrot.lane.b32.xlu0 %v2165_v44, %s2870_s13  ;;  %v2536_v23 = vmul.f32 -1.442695, %v2165_v44 }
 0xff3   :  { %2777 = vpow2.f32 %v2536_v23 }
 0xff8   :  { %v2167_v53 = vpop.f32.mrf.mxu1 }
 0xff9   :  { %2214 = vrot.lane.b32.xlu0 %v2167_v53, %s2870_s13  ;;  %v2537_v3 = vmul.f32 -1.442695, %v2167_v53  ;;  %v2778_v19 = vpop.eup %2777 }
 0xffa   :  { %v2176_v8 = vadd.f32 1.0, %v2778_v19 }
 0xffb   :  { %2779 = vpow2.f32 %v2537_v3 }
 0xffc   :  { %2781 = vrcp.f32 %v2176_v8  ;;  %vm2183_vm1 = vweird.f32 %v2176_v8  ;;  %v2189_v43 = vand.u32 2147483648, %v2176_v8  ;;  %v2187_v32 = vand.u32 2147483647, %v2176_v8 }
 0xffe   :  { %v2190_v33 = vor.u32 1.1754944e-38, %v2189_v43  ;;  %vm2188_vm6 = vcmp.eq.f32.partialorder %v2187_v32, 8.507059e+37 }
0x1001   :  { %v2780_v21 = vpop.eup %2779 }
0x1002   :  { %v2177_v38 = vadd.f32 1.0, %v2780_v21  ;;  %v2782_v4 = vpop.eup %2781 }
0x1003   :  { %v2179_v29 = vmul.f32 %v2782_v4, %v2176_v8  ;;  %vm2184_vm13 = vweird.f32 %v2782_v4 }
0x1004   :  { %2783 = vrcp.f32 %v2177_v38  ;;  %v2204_v45 = vand.u32 2147483648, %v2177_v38  ;;  %vm2198_vm2 = vweird.f32 %v2177_v38  ;;  %v2202_v52 = vand.u32 2147483647, %v2177_v38  ;;  %vm2185_vm3 = vmor %vm2183_vm1, %vm2184_vm13 }
0x1005   :  { %v2180_v48 = vsub.f32 1.0, %v2179_v29  ;;  %vm2358_vm13 = vcmask 25600  }
0x1006   :  { %v2205_v20 = vor.u32 1.1754944e-38, %v2204_v45  ;;  %vm2203_vm5 = vcmp.eq.f32.partialorder %v2202_v52, 8.507059e+37 }
0x1007   :  { %v2181_v54 = vmul.f32 %v2782_v4, %v2180_v48 }
0x1009   :  { %v2182_v26 = vadd.f32 %v2782_v4, %v2181_v54 }
0x100a   :  { %v2784_v10 = vpop.eup %2783 }
0x100b   :  { %v2194_v16 = vmul.f32 %v2784_v10, %v2177_v38  ;;  %vm2199_vm14 = vweird.f32 %v2784_v10  ;;  %v2186_v62 = vsel %vm2185_vm3, %v2782_v4, %v2182_v26 }
0x100c   :  { %vm2200_vm4 = vmor %vm2198_vm2, %vm2199_vm14  ;;  %v2191_v24 = vsel %vm2188_vm6, %v2190_v33, %v2186_v62 }
0x100d   :  { %v2195_v30 = vsub.f32 1.0, %v2194_v16  ;;  %v2208_v0 = vmul.f32 %v2191_v24, %v2165_v44  ;;  %v2686_v44 = vld [vmem:[%s3877_s5 + $0x4] ss:$0 sm:$0xff] }
0x100f   :  { %v2196_v36 = vmul.f32 %v2784_v10, %v2195_v30 }
0x1011   :  { %v2197_v1 = vadd.f32 %v2784_v10, %v2196_v36 }
0x1013   :  { %v2201_v51 = vsel %vm2200_vm4, %v2784_v10, %v2197_v1 }
0x1014   :  { %v2206_v34 = vsel %vm2203_vm5, %v2205_v20, %v2201_v51 }
0x1015   :  { %v2209_v17 = vmul.f32 %v2206_v34, %v2167_v53 }
0x1063   :  { %v2213_v25 = vpop.permute.xlu0 %2212 }
0x1064   :  { %v2218_v42 = vmul.f32 %v2213_v25, %v2208_v0 }
0x106b   :  { %v2215_v57 = vpop.permute.xlu0 %2214 }
0x106c   :  { %v2219_v56 = vmul.f32 %v2215_v57, %v2209_v17 }
0x106e   :  { %v2220_v31 = vpack.c.bf16 %v2219_v56, %v2218_v42 }
0x1070   :  { %2562 = vmatmul.msk.bf16.vlgmr.msrb.gmra.mxu2 %vm1173_vm15, %v2220_v31 }
0x10f3   :  { %v2266_v60 = vpop.f32.mrf.mxu2 }
0x10f4   :  { %v2271_v27 = vadd.f32 %v2266_v60, %v3808_v2  ;;  %v2594_v2 = vld [vmem:[%s3882_s10] sm:$0xff]  ;;  %s2563_s10 = sld [smem:[#allocation4 + $0x1]] }
0x10f5   :  { %2352 = vmatpush.bf16.msra.mxu3 %v2594_v2 }
0x10f6   :  { %v2274_v35 = vmul.f32 %v2271_v27, %v2271_v27 }
0x10f8   :  { %v2276_v37 = vsel %vm75_vm0, %v2274_v35, 0.0 }
0x10f9   :  { %2277 = vadd.xlane.f32.xlu0 %v2276_v37 }
0x10fa   :  { %s2401_s5 = scalar_lea.vmem [#allocation2], %s2563_s10 }
0x10fb   :  { %v2268_v47 = vpop.f32.mrf.mxu2 }
0x10fc   :  { %v2272_v39 = vadd.f32 %v2268_v47, %v3814_v28 }
0x10fe   :  { %v2275_v40 = vmul.f32 %v2272_v39, %v2272_v39 }
0x1100   :  { %v2279_v41 = vsel %vm75_vm0, %v2275_v40, 0.0 }
0x1101   :  { %2280 = vadd.xlane.f32.xlu1 %v2279_v41 }
0x116c   :  { %v2278_v22 = vpop.xlane.xlu0 %2277 }
0x116d   :  { %v2282_v49 = vmul.f32 %v2278_v22, %v2949_v13 }
0x116f   :  { %v2284_v11 = vadd.f32 1e-06, %v2282_v49 }
0x1171   :  { %2785 = vrsqrt.f32 %v2284_v11  ;;  %vm2292_vm8 = vweird.f32 %v2284_v11 }
0x1174   :  { %v2281_v15 = vpop.xlane.xlu1 %2280 }
0x1175   :  { %v2283_v28 = vmul.f32 %v2281_v15, %v2949_v13 }
0x1177   :  { %v2786_v6 = vpop.eup %2785  ;;  %v2285_v9 = vadd.f32 1e-06, %v2283_v28 }
0x1178   :  { %v2287_v46 = vmul.f32 %v2786_v6, %v2284_v11  ;;  %vm2293_vm15 = vweird.f32 %v2786_v6 }
0x1179   :  { %2787 = vrsqrt.f32 %v2285_v9  ;;  %vm2294_vm9 = vmor %vm2292_vm8, %vm2293_vm15  ;;  %vm2302_vm11 = vweird.f32 %v2285_v9 }
0x117a   :  { %v2288_v58 = vmul.f32 %v2786_v6, %v2287_v46 }
0x117c   :  { %v2289_v63 = vmul.f32 0.5, %v2288_v58 }
0x117e   :  { %v2290_v61 = vsub.f32 1.5, %v2289_v63 }
0x117f   :  { %v2788_v50 = vpop.eup %2787 }
0x1180   :  { %v2291_v18 = vmul.f32 %v2786_v6, %v2290_v61  ;;  %v2297_v7 = vmul.f32 %v2788_v50, %v2285_v9  ;;  %vm2303_vm10 = vweird.f32 %v2788_v50 }
0x1181   :  { %vm2304_vm7 = vmor %vm2302_vm11, %vm2303_vm10 }
0x1182   :  { %v2295_v5 = vsel %vm2294_vm9, %v2786_v6, %v2291_v18  ;;  %v2298_v13 = vmul.f32 %v2788_v50, %v2297_v7 }
0x1183   :  { %v2306_v53 = vmul.f32 %v2295_v5, %v2271_v27 }
0x1184   :  { %v2299_v23 = vmul.f32 0.5, %v2298_v13 }
0x1185   :  { %v2309_v3 = vmul.f32 %v2686_v44, %v2306_v53 }
0x1186   :  { %v2300_v19 = vsub.f32 1.5, %v2299_v23 }
0x1187   :  { %2311 = vst.msk [vmem:[#allocation2] sm:$0xff] %vm75_vm0, %v2309_v3 }
0x1188   :  { %v2301_v21 = vmul.f32 %v2788_v50, %v2300_v19 }
0x118a   :  { %v2305_v12 = vsel %vm2304_vm7, %v2788_v50, %v2301_v21 }
0x118b   :  { %v2307_v8 = vmul.f32 %v2305_v12, %v2272_v39 }
0x118d   :  { %v2310_v14 = vmul.f32 %v2686_v44, %v2307_v8 }
0x118f   :  { %2312 = vst.msk [vmem:[#allocation2 + $0x8] sm:$0xff] %vm75_vm0, %v2310_v14 }
0x1196   :  { %v2564_v38 = vld [vmem:[%s2401_s5 + $0x8] sm:$0x1]  ;;  %v2315_v4 = vld [vmem:[%s2314_s20] sm:$0x1] }
0x1197   :  { %v2321_v55 = vrot.slane %v2564_v38, 7 }
0x1199   :  { %v2324_v10 = vsel %vm2323_vm12, %v2315_v4, %v2321_v55 }
0x119a   :  { %v2325_v16 = vpack.c.bf16 %v2324_v10, %v2324_v10 }
0x119c   :  { %2573 = vmatmul.msk.bf16.vlgmr.msra.gmra.mxu3 %vm75_vm0, %v2325_v16 }
0x121f   :  { %v2354_v29 = vpop.f32.mrf.mxu3 }
0x1220   :  { %v2359_v30 = vsel %vm2358_vm13, %v2354_v29, -inf }
0x1221   :  { %2360 = vmax.xlane.f32.xlu2 %v2359_v30 }
0x1227   :  { %v2356_v48 = vpop.f32.mrf.mxu3 }
0x1294   :  { %v2361_v36 = vpop.xlane.xlu2 %2360 }
0x1295   :  { %v2362_v54 = vsub.f32 %v2354_v29, %v2361_v36 }
0x1297   :  { %v2363_v1 = vmul.f32 1.442695, %v2362_v54 }
0x1299   :  { %2789 = vpow2.f32 %v2363_v1 }
0x129f   :  { %v2790_v26 = vpop.eup %2789 }
0x12a0   :  { %v2365_v45 = vsel %vm2358_vm13, %v2790_v26, 0.0 }
0x12a1   :  { %2366 = vadd.xlane.f32.xlu1 %v2365_v45 }
0x1314   :  { %v2367_v43 = vpop.xlane.xlu1 %2366 }
0x1315   :  { %2791 = vrcp.f32 %v2367_v43  ;;  %v2379_v51 = vand.u32 2147483648, %v2367_v43  ;;  %v2377_v20 = vand.u32 2147483647, %v2367_v43  ;;  %vm2373_vm14 = vweird.f32 %v2367_v43 }
0x1317   :  { %v2380_v34 = vor.u32 1.1754944e-38, %v2379_v51  ;;  %vm2378_vm2 = vcmp.eq.f32.partialorder %v2377_v20, 8.507059e+37 }
0x131b   :  { %v2792_v52 = vpop.eup %2791 }
0x131c   :  { %v2369_v32 = vmul.f32 %v2792_v52, %v2367_v43  ;;  %vm2374_vm0 = vweird.f32 %v2792_v52 }
0x131d   :  { %vm2375_vm1 = vmor %vm2373_vm14, %vm2374_vm0 }
0x131e   :  { %v2370_v25 = vsub.f32 1.0, %v2369_v32 }
0x1320   :  { %v2371_v62 = vmul.f32 %v2792_v52, %v2370_v25 }
0x1322   :  { %v2372_v33 = vadd.f32 %v2792_v52, %v2371_v62 }
0x1324   :  { %v2376_v24 = vsel %vm2375_vm1, %v2792_v52, %v2372_v33 }
0x1325   :  { %v2381_v17 = vsel %vm2378_vm2, %v2380_v34, %v2376_v24 }
0x1326   :  { %v2382_v0 = vmul.f32 %v2790_v26, %v2381_v17 }
0x1328   :  { %2383 = vst.msk [vmem:[#allocation5] sm:$0x3] %vm2358_vm13, %v2382_v0 }
0x1329   :  { %2394 = dma.vmem_to_hbm [thread:$0]  %s2390_s12, 32, %s2392_s25, [#allocation6]  }
0x132a   :  { %2857 = dma.done.wait [#allocation6], 32  }
0x132b   :  { %2858 = vsyncadd [#allocation6], 4294967264 }
0x132c   :  { %2399 = vsyncpa [#allocation6], 1 }

</bundles_post_ra>
